<compile_context>
chip_gen: v7x
topology: tpu7x:2x2x1
jax: 0.10.0
libtpu: 0.0.40
codegen_flags: <defaults>
</compile_context>

<pallas_src>
import jax
import jax.numpy as jnp
from jax.experimental import pallas as pl
from jax.experimental.pallas import tpu as pltpu

IMG_SIZE = 28 * 28              # 784
H0, H1 = 640, 320
H2, H2_PAD = 50, 64             # fc2 out dim padded 50 -> 64
NUM_CLASSES, OUT_PAD = 10, 128  # fc3 out dim padded 10 -> 128 (lane-dense stores)


def _mlp_kernel(x_ref, w0_ref, b0_ref, w1_ref, b1_ref,
                w2_ref, b2_ref, w3_ref, b3_ref, out_ref):
    # Cast the f32 input tile to bf16 in-kernel (no separate wrapper cast pass).
    x = x_ref[...].astype(jnp.bfloat16)
    # fc0 + relu   (bf16 MXU inputs, f32 accumulation; bias added in f32)
    h = jnp.dot(x, w0_ref[...], preferred_element_type=jnp.float32)
    h = jnp.maximum(h + b0_ref[...], 0.0).astype(jnp.bfloat16)
    # fc1 + relu
    h = jnp.dot(h, w1_ref[...], preferred_element_type=jnp.float32)
    h = jnp.maximum(h + b1_ref[...], 0.0).astype(jnp.bfloat16)
    # fc2 + relu   (out dim zero-padded 50 -> 64; padded lanes stay 0 after relu)
    h = jnp.dot(h, w2_ref[...], preferred_element_type=jnp.float32)
    h = jnp.maximum(h + b2_ref[...], 0.0).astype(jnp.bfloat16)
    # dropout: F.dropout(x, training=self.training) -> identity at inference
    # TODO(synk): no PRNG path for training-mode dropout (eval-mode forward only).
    # fc3          (out dim zero-padded 10 -> 128 for lane-dense output stores)
    logits = jnp.dot(h, w3_ref[...], preferred_element_type=jnp.float32)
    logits = logits + b3_ref[...]
    # Mask padded class lanes so they don't perturb the softmax normalizer.
    # Keep all mask/softmax math in f32; only the final store is bf16.
    lane = jax.lax.broadcasted_iota(jnp.int32, logits.shape, dimension=1)
    logits = jnp.where(lane < NUM_CLASSES, logits, jnp.float32(-1e30))
    # log_softmax over last dim (numerically stable)
    m = jnp.max(logits, axis=-1, keepdims=True)
    s = logits - m
    lse = jnp.log(jnp.sum(jnp.exp(s), axis=-1, keepdims=True))
    out_ref[...] = (s - lse).astype(out_ref.dtype)


def _pick_batch_tile(batch):
    """Batch tile policy:
       - >=2048 rows: 1024-row tiles (amortize ~0.35us/step overhead, >=2 steps)
       - >=1024 rows: 512-row tiles
       - >= 256 rows: 128-row tiles (>=2 grid steps so both v7x TCs get work)
       - small batches: one padded tile, >=16 rows (bf16 sublane packing)."""
    if batch >= 2048:
        return 1024
    if batch >= 1024:
        return 512
    if batch >= 256:
        return 128
    return max(16, ((batch + 15) // 16) * 16)


def net_forward(x_nchw, kernel_params):
    """x_nchw: (B, 1, 28, 28) float32.  kernel_params from prepare_params().
    Returns (B, 10) bfloat16 log-probs."""
    w0, b0, w1, b1, w2, b2, w3, b3 = kernel_params
    B = x_nchw.shape[0]
    x = x_nchw.reshape(B, IMG_SIZE)          # x.view(-1, img_size); stays f32

    TB = _pick_batch_tile(B)
    if B < TB:
        # Tiny batch: pad up to a single tile (cost is negligible at this size).
        x = jnp.pad(x, ((0, TB - B), (0, 0)))
        rows = TB
    else:
        # Ragged tail (if any) is handled by Pallas block masking: padded rows
        # only feed their own (discarded) output rows.
        rows = B
    grid = (pl.cdiv(rows, TB),)

    # x / out tiles walk the batch; weights & biases stay resident in VMEM
    # (constant index_maps -> never re-fetched from HBM across grid steps).
    x_spec = pl.BlockSpec((TB, IMG_SIZE), lambda i: (i, 0))
    out_spec = pl.BlockSpec((TB, OUT_PAD), lambda i: (i, 0))
    const = lambda i: (0, 0)
    w_specs = [
        pl.BlockSpec((IMG_SIZE, H0), const), pl.BlockSpec((1, H0), const),
        pl.BlockSpec((H0, H1), const),       pl.BlockSpec((1, H1), const),
        pl.BlockSpec((H1, H2_PAD), const),   pl.BlockSpec((1, H2_PAD), const),
        pl.BlockSpec((H2_PAD, OUT_PAD), const), pl.BlockSpec((1, OUT_PAD), const),
    ]

    flops = 2 * rows * (IMG_SIZE * H0 + H0 * H1 + H1 * H2_PAD + H2_PAD * OUT_PAD)
    weight_bytes = 2 * (IMG_SIZE * H0 + H0 * H1 + H1 * H2_PAD + H2_PAD * OUT_PAD)
    bias_bytes = 4 * (H0 + H1 + H2_PAD + OUT_PAD)
    io_bytes = rows * IMG_SIZE * 4 + rows * OUT_PAD * 2   # f32 in, bf16 out
    cost = pl.CostEstimate(flops=flops,
                           transcendentals=rows * (OUT_PAD + 1),  # exp + log
                           bytes_accessed=weight_bytes + bias_bytes + io_bytes)

    out = pl.pallas_call(
        _mlp_kernel,
        out_shape=jax.ShapeDtypeStruct((rows, OUT_PAD), jnp.bfloat16),
        grid=grid,
        in_specs=[x_spec] + w_specs,
        out_specs=out_spec,
        compiler_params=pltpu.CompilerParams(
            dimension_semantics=("parallel",),
            vmem_limit_bytes=40 * 1024 * 1024),
        cost_estimate=cost,
    )(x, w0, b0, w1, b1, w2, b2, w3, b3)
    # Slice from the bf16 buffer (half the bytes of an f32 slice pass); the
    # consumer can fuse/cast this tiny (B, 10) result as needed.
    return out[:B, :NUM_CLASSES]


def init_params(key):
    """nn.Linear-like init; weights stored as (in, out), all float32, unpadded."""
    dims = [(IMG_SIZE, H0), (H0, H1), (H1, H2), (H2, NUM_CLASSES)]
    params = []
    for i, (din, dout) in enumerate(dims):
        kw, kb = jax.random.split(jax.random.fold_in(key, i))
        bound = 1.0 / jnp.sqrt(jnp.float32(din))
        w = jax.random.uniform(kw, (din, dout), jnp.float32, -bound, bound)
        b = jax.random.uniform(kb, (1, dout), jnp.float32, -bound, bound)
        params.extend([w, b])
    return tuple(params)


def prepare_params(params):
    """Cast weights to bf16 and zero-pad fc2 (50->64) / fc3 (to 64x128)."""
    w0, b0, w1, b1, w2, b2, w3, b3 = params
    w2p = jnp.pad(w2, ((0, 0), (0, H2_PAD - H2)))
    b2p = jnp.pad(b2, ((0, 0), (0, H2_PAD - H2)))
    w3p = jnp.pad(w3, ((0, H2_PAD - H2), (0, OUT_PAD - NUM_CLASSES)))
    b3p = jnp.pad(b3, ((0, 0), (0, OUT_PAD - NUM_CLASSES)))
    return (w0.astype(jnp.bfloat16), b0.astype(jnp.float32),
            w1.astype(jnp.bfloat16), b1.astype(jnp.float32),
            w2p.astype(jnp.bfloat16), b2p.astype(jnp.float32),
            w3p.astype(jnp.bfloat16), b3p.astype(jnp.float32))


def reference_forward(x_nchw, params):
    """Plain-JAX f32 reference for sanity checking."""
    B = x_nchw.shape[0]
    h = x_nchw.reshape(B, IMG_SIZE)
    w0, b0, w1, b1, w2, b2, w3, b3 = params
    h = jnp.maximum(h @ w0 + b0, 0.0)
    h = jnp.maximum(h @ w1 + b1, 0.0)
    h = jnp.maximum(h @ w2 + b2, 0.0)
    logits = h @ w3 + b3
    return jax.nn.log_softmax(logits, axis=-1)


if __name__ == "__main__":
    key = jax.random.PRNGKey(0)
    kx, kp = jax.random.split(key)

    params = init_params(kp)
    kparams = prepare_params(params)
    fwd = jax.jit(net_forward)

    # Small batch: single padded tile path.
    B = 8
    x = jax.random.normal(kx, (B, 1, 28, 28), jnp.float32)  # NCHW input
    out = jax.block_until_ready(fwd(x, kparams))
    ref = reference_forward(x, params)
    assert out.shape == (B, NUM_CLASSES)
    out_f32 = out.astype(jnp.float32)
    # log_softmax rows should sum (in prob space) to ~1 (bf16 output -> loose tol)
    assert jnp.allclose(jnp.sum(jnp.exp(out_f32), axis=-1), 1.0, atol=3e-2)
    # bf16 weights/activations/output -> looser tolerance vs the f32 reference
    assert jnp.allclose(out_f32, ref, atol=7e-2, rtol=7e-2), "mismatch vs reference"

    # Larger batch: multi-step grid with a ragged tail (no jnp.pad pass).
    B2 = 300
    x2 = jax.random.normal(jax.random.fold_in(kx, 1), (B2, 1, 28, 28), jnp.float32)
    out2 = jax.block_until_ready(fwd(x2, kparams))
    ref2 = reference_forward(x2, params)
    assert out2.shape == (B2, NUM_CLASSES)
    assert jnp.allclose(out2.astype(jnp.float32), ref2, atol=7e-2, rtol=7e-2), \
        "mismatch vs reference (ragged-tail path)"

    print("KERNEL_OK")
</pallas_src>

<mosaic_0001>
module attributes {stable_mosaic.version = 11 : i64} {
  func.func @_mlp_kernel(%arg0: i32, %arg1: memref<16x784xf32, #tpu.memory_space<vmem>>, %arg2: memref<784x640xbf16, #tpu.memory_space<vmem>>, %arg3: memref<1x640xf32, #tpu.memory_space<vmem>>, %arg4: memref<640x320xbf16, #tpu.memory_space<vmem>>, %arg5: memref<1x320xf32, #tpu.memory_space<vmem>>, %arg6: memref<320x64xbf16, #tpu.memory_space<vmem>>, %arg7: memref<1x64xf32, #tpu.memory_space<vmem>>, %arg8: memref<64x128xbf16, #tpu.memory_space<vmem>>, %arg9: memref<1x128xf32, #tpu.memory_space<vmem>>, %arg10: memref<16x128xbf16, #tpu.memory_space<vmem>>) attributes {dimension_semantics = [#tpu.dimension_semantics<parallel>], iteration_bounds = array<i64: 1>, scalar_prefetch = 0 : i64, scratch_operands = 0 : i64, tpu.core_type = #tpu.core_type<tc>, window_params = [{transform_indices = @transform_0, window_bounds = array<i64: 16, 784>}, {pipeline_mode = #tpu.pipeline_mode<synchronous>, transform_indices = @transform_1, window_bounds = array<i64: 784, 640>}, {pipeline_mode = #tpu.pipeline_mode<synchronous>, transform_indices = @transform_2, window_bounds = array<i64: 1, 640>}, {pipeline_mode = #tpu.pipeline_mode<synchronous>, transform_indices = @transform_3, window_bounds = array<i64: 640, 320>}, {pipeline_mode = #tpu.pipeline_mode<synchronous>, transform_indices = @transform_4, window_bounds = array<i64: 1, 320>}, {pipeline_mode = #tpu.pipeline_mode<synchronous>, transform_indices = @transform_5, window_bounds = array<i64: 320, 64>}, {pipeline_mode = #tpu.pipeline_mode<synchronous>, transform_indices = @transform_6, window_bounds = array<i64: 1, 64>}, {pipeline_mode = #tpu.pipeline_mode<synchronous>, transform_indices = @transform_7, window_bounds = array<i64: 64, 128>}, {pipeline_mode = #tpu.pipeline_mode<synchronous>, transform_indices = @transform_8, window_bounds = array<i64: 1, 128>}, {transform_indices = @transform_9, window_bounds = array<i64: 16, 128>}]} {
    %c0 = arith.constant 0 : index
    %c0_0 = arith.constant 0 : index
    %0 = vector.load %arg1[%c0, %c0_0] : memref<16x784xf32, #tpu.memory_space<vmem>>, vector<16x784xf32>
    %1 = arith.truncf %0 : vector<16x784xf32> to vector<16x784xbf16>
    %c0_1 = arith.constant 0 : index
    %c0_2 = arith.constant 0 : index
    %2 = vector.load %arg2[%c0_1, %c0_2] : memref<784x640xbf16, #tpu.memory_space<vmem>>, vector<784x640xbf16>
    %cst = arith.constant dense<0.000000e+00> : vector<16x640xf32>
    %3 = tpu.matmul %1, %2, %cst {dimension_numbers = #tpu.dot_dimension_numbers<[1], [0], [0], [1], [0, 0, 1, 1], [], []>} : vector<16x784xbf16>, vector<784x640xbf16>, vector<16x640xf32> -> vector<16x640xf32>
    %c0_3 = arith.constant 0 : index
    %c0_4 = arith.constant 0 : index
    %4 = vector.load %arg3[%c0_3, %c0_4] : memref<1x640xf32, #tpu.memory_space<vmem>>, vector<1x640xf32>
    %5 = vector.broadcast %4 : vector<1x640xf32> to vector<16x640xf32>
    %6 = arith.addf %3, %5 : vector<16x640xf32>
    %cst_5 = arith.constant 0.000000e+00 : f32
    %7 = vector.broadcast %cst_5 : f32 to vector<16x640xf32>
    %8 = arith.maximumf %6, %7 : vector<16x640xf32>
    %9 = arith.truncf %8 : vector<16x640xf32> to vector<16x640xbf16>
    %c0_6 = arith.constant 0 : index
    %c0_7 = arith.constant 0 : index
    %10 = vector.load %arg4[%c0_6, %c0_7] : memref<640x320xbf16, #tpu.memory_space<vmem>>, vector<640x320xbf16>
    %cst_8 = arith.constant dense<0.000000e+00> : vector<16x320xf32>
    %11 = tpu.matmul %9, %10, %cst_8 {dimension_numbers = #tpu.dot_dimension_numbers<[1], [0], [0], [1], [0, 0, 1, 1], [], []>} : vector<16x640xbf16>, vector<640x320xbf16>, vector<16x320xf32> -> vector<16x320xf32>
    %c0_9 = arith.constant 0 : index
    %c0_10 = arith.constant 0 : index
    %12 = vector.load %arg5[%c0_9, %c0_10] : memref<1x320xf32, #tpu.memory_space<vmem>>, vector<1x320xf32>
    %13 = vector.broadcast %12 : vector<1x320xf32> to vector<16x320xf32>
    %14 = arith.addf %11, %13 : vector<16x320xf32>
    %cst_11 = arith.constant 0.000000e+00 : f32
    %15 = vector.broadcast %cst_11 : f32 to vector<16x320xf32>
    %16 = arith.maximumf %14, %15 : vector<16x320xf32>
    %17 = arith.truncf %16 : vector<16x320xf32> to vector<16x320xbf16>
    %c0_12 = arith.constant 0 : index
    %c0_13 = arith.constant 0 : index
    %18 = vector.load %arg6[%c0_12, %c0_13] : memref<320x64xbf16, #tpu.memory_space<vmem>>, vector<320x64xbf16>
    %cst_14 = arith.constant dense<0.000000e+00> : vector<16x64xf32>
    %19 = tpu.matmul %17, %18, %cst_14 {dimension_numbers = #tpu.dot_dimension_numbers<[1], [0], [0], [1], [0, 0, 1, 1], [], []>} : vector<16x320xbf16>, vector<320x64xbf16>, vector<16x64xf32> -> vector<16x64xf32>
    %c0_15 = arith.constant 0 : index
    %c0_16 = arith.constant 0 : index
    %20 = vector.load %arg7[%c0_15, %c0_16] : memref<1x64xf32, #tpu.memory_space<vmem>>, vector<1x64xf32>
    %21 = vector.broadcast %20 : vector<1x64xf32> to vector<16x64xf32>
    %22 = arith.addf %19, %21 : vector<16x64xf32>
    %cst_17 = arith.constant 0.000000e+00 : f32
    %23 = vector.broadcast %cst_17 : f32 to vector<16x64xf32>
    %24 = arith.maximumf %22, %23 : vector<16x64xf32>
    %25 = arith.truncf %24 : vector<16x64xf32> to vector<16x64xbf16>
    %c0_18 = arith.constant 0 : index
    %c0_19 = arith.constant 0 : index
    %26 = vector.load %arg8[%c0_18, %c0_19] : memref<64x128xbf16, #tpu.memory_space<vmem>>, vector<64x128xbf16>
    %cst_20 = arith.constant dense<0.000000e+00> : vector<16x128xf32>
    %27 = tpu.matmul %25, %26, %cst_20 {dimension_numbers = #tpu.dot_dimension_numbers<[1], [0], [0], [1], [0, 0, 1, 1], [], []>} : vector<16x64xbf16>, vector<64x128xbf16>, vector<16x128xf32> -> vector<16x128xf32>
    %c0_21 = arith.constant 0 : index
    %c0_22 = arith.constant 0 : index
    %28 = vector.load %arg9[%c0_21, %c0_22] : memref<1x128xf32, #tpu.memory_space<vmem>>, vector<1x128xf32>
    %29 = vector.broadcast %28 : vector<1x128xf32> to vector<16x128xf32>
    %30 = arith.addf %27, %29 : vector<16x128xf32>
    %31 = tpu.iota {dimensions = array<i32: 1>} : vector<16x128xi32>
    %c10_i32 = arith.constant 10 : i32
    %32 = vector.broadcast %c10_i32 : i32 to vector<16x128xi32>
    %33 = arith.cmpi slt, %31, %32 : vector<16x128xi32>
    %cst_23 = arith.constant -1.000000e+30 : f32
    %34 = vector.broadcast %cst_23 : f32 to vector<16x128xf32>
    %35 = arith.select %33, %30, %34 : vector<16x128xi1>, vector<16x128xf32>
    %cst_24 = arith.constant dense<0xFF800000> : vector<16xf32>
    %36 = vector.multi_reduction <maximumf>, %35, %cst_24 [1] : vector<16x128xf32> to vector<16xf32>
    %37 = vector.shape_cast %36 : vector<16xf32> to vector<16x1xf32>
    %38 = vector.broadcast %37 : vector<16x1xf32> to vector<16x128xf32>
    %39 = arith.subf %35, %38 : vector<16x128xf32>
    %40 = math.exp %39 : vector<16x128xf32>
    %cst_25 = arith.constant dense<0.000000e+00> : vector<16xf32>
    %41 = vector.multi_reduction <add>, %40, %cst_25 [1] : vector<16x128xf32> to vector<16xf32>
    %42 = vector.shape_cast %41 : vector<16xf32> to vector<16x1xf32>
    %43 = math.log %42 : vector<16x1xf32>
    %44 = vector.broadcast %43 : vector<16x1xf32> to vector<16x128xf32>
    %45 = arith.subf %39, %44 : vector<16x128xf32>
    %46 = arith.truncf %45 : vector<16x128xf32> to vector<16x128xbf16>
    %c0_26 = arith.constant 0 : index
    %c0_27 = arith.constant 0 : index
    %47 = vector.load %arg10[%c0_26, %c0_27] : memref<16x128xbf16, #tpu.memory_space<vmem>>, vector<16x128xbf16>
    tpu.vector_store %arg10[%c0_26, %c0_27], %46 {strides = array<i32>} : memref<16x128xbf16, #tpu.memory_space<vmem>>, vector<16x128xbf16>,
    return
  }
  func.func @transform_0(%arg0: i32) -> (i32, i32) {
    %c0_i32 = arith.constant 0 : i32
    %c0_i32_0 = arith.constant 0 : i32
    return %arg0, %c0_i32 : i32, i32
  }
  func.func @transform_1(%arg0: i32) -> (i32, i32) {
    %c0_i32 = arith.constant 0 : i32
    %c0_i32_0 = arith.constant 0 : i32
    %c0_i32_1 = arith.constant 0 : i32
    return %c0_i32, %c0_i32_0 : i32, i32
  }
  func.func @transform_2(%arg0: i32) -> (i32, i32) {
    %c0_i32 = arith.constant 0 : i32
    %c0_i32_0 = arith.constant 0 : i32
    %c0_i32_1 = arith.constant 0 : i32
    return %c0_i32, %c0_i32_0 : i32, i32
  }
  func.func @transform_3(%arg0: i32) -> (i32, i32) {
    %c0_i32 = arith.constant 0 : i32
    %c0_i32_0 = arith.constant 0 : i32
    %c0_i32_1 = arith.constant 0 : i32
    return %c0_i32, %c0_i32_0 : i32, i32
  }
  func.func @transform_4(%arg0: i32) -> (i32, i32) {
    %c0_i32 = arith.constant 0 : i32
    %c0_i32_0 = arith.constant 0 : i32
    %c0_i32_1 = arith.constant 0 : i32
    return %c0_i32, %c0_i32_0 : i32, i32
  }
  func.func @transform_5(%arg0: i32) -> (i32, i32) {
    %c0_i32 = arith.constant 0 : i32
    %c0_i32_0 = arith.constant 0 : i32
    %c0_i32_1 = arith.constant 0 : i32
    return %c0_i32, %c0_i32_0 : i32, i32
  }
  func.func @transform_6(%arg0: i32) -> (i32, i32) {
    %c0_i32 = arith.constant 0 : i32
    %c0_i32_0 = arith.constant 0 : i32
    %c0_i32_1 = arith.constant 0 : i32
    return %c0_i32, %c0_i32_0 : i32, i32
  }
  func.func @transform_7(%arg0: i32) -> (i32, i32) {
    %c0_i32 = arith.constant 0 : i32
    %c0_i32_0 = arith.constant 0 : i32
    %c0_i32_1 = arith.constant 0 : i32
    return %c0_i32, %c0_i32_0 : i32, i32
  }
  func.func @transform_8(%arg0: i32) -> (i32, i32) {
    %c0_i32 = arith.constant 0 : i32
    %c0_i32_0 = arith.constant 0 : i32
    %c0_i32_1 = arith.constant 0 : i32
    return %c0_i32, %c0_i32_0 : i32, i32
  }
  func.func @transform_9(%arg0: i32) -> (i32, i32) {
    %c0_i32 = arith.constant 0 : i32
    %c0_i32_0 = arith.constant 0 : i32
    return %arg0, %c0_i32 : i32, i32
  }
}

</mosaic_0001>

<bundles_post_ra>
// kernel: net_forward.1
= control target key start
LH: loop header
LB: loop body
LE: loop exit
PB: predicated region body
PF: predicated region fallthrough
CT: control target
= control target key end

     0   :  { %vm1649_vm0 = vcmask 130048   ;;  %vm4824_vm1 = vmmov 0   ;;  %vm3421_vm2 = vcmask 523264   ;;  %s6211_s1 = inlined_call_operand.vmem [shape: bf16[784,640], index: 1, kind: input, shape index: {}]   ;;  %s6212_s0 = inlined_call_operand.vmem [shape: f32[16,784], index: 0, kind: input, shape index: {}]   ;;  %s6213_s3 = inlined_call_operand.vmem [shape: bf16[640,320], index: 3, kind: input, shape index: {}]   ;;  %s6214_s2 = inlined_call_operand.vmem [shape: f32[1,640], index: 2, kind: input, shape index: {}]   ;;  %s6215_s5 = inlined_call_operand.vmem [shape: bf16[320,64], index: 5, kind: input, shape index: {}]   ;;  %s6216_s4 = inlined_call_operand.vmem [shape: f32[1,320], index: 4, kind: input, shape index: {}]   ;;  %s6217_s7 = inlined_call_operand.vmem [shape: bf16[64,128], index: 7, kind: input, shape index: {}]   ;;  %s6218_s6 = inlined_call_operand.vmem [shape: f32[1,64], index: 6, kind: input, shape index: {}]   ;;  %s6219_s8 = inlined_call_operand.vmem [shape: f32[1,128], index: 8, kind: input, shape index: {}]   ;;  %s6220_s9 = inlined_call_operand.vmem [shape: bf16[16,128], index: 9, kind: output, shape index: {}]  }
   0x1   :  { %v4287_v0 = vld [vmem:[%s6211_s1 + $0x4] ss:$20 sps:$4 sm:$0xff]   ;;  %v4289_v1 = vld [vmem:[%s6211_s1 + $0xc] ss:$20 sps:$4 sm:$0xff]   ;;  %v4292_v3 = vld [vmem:[%s6211_s1 + $0x8] ss:$20 sps:$4 sm:$0xff]  }
   0x2   :  { %1653 = vmatprep.subr.bf16.mxu0 %v4287_v0  ;;  %v4291_v2 = vld [vmem:[%s6211_s1] ss:$20 sps:$4 sm:$0xff]   ;;  %1825 = vmatprep.subr.bf16.mxu1 %v4289_v1  ;;  %v4297_v6 = vld [vmem:[%s6211_s1 + $0x28] ss:$20 sps:$4 sm:$0xff]   ;;  %v4298_v7 = vld [vmem:[%s6211_s1 + $0x30] ss:$20 sps:$4 sm:$0xff]  }
   0x3   :  { %v4293_v4 = vld [vmem:[%s6211_s1 + $0x2c] ss:$20 sps:$4 sm:$0xff]   ;;  %1654 = vmatpush1.bf16.msra.mxu0 %v4291_v2  ;;  %1826 = vmatpush1.bf16.msra.mxu1 %v4292_v3  ;;  %v4295_v5 = vld [vmem:[%s6211_s1 + $0x34] ss:$20 sps:$4 sm:$0xff]   ;;  %v4301_v9 = vld [vmem:[%s6211_s1 + $0x5c] ss:$20 sps:$4 sm:$0xff]  }
   0x4   :  { %1655 = vmatprep.subr.bf16.mxu0 %v4293_v4  ;;  %1827 = vmatprep.subr.bf16.mxu1 %v4295_v5  ;;  %v4299_v8 = vld [vmem:[%s6211_s1 + $0x54] ss:$20 sps:$4 sm:$0xff]   ;;  %v4303_v10 = vld [vmem:[%s6211_s1 + $0x50] ss:$20 sps:$4 sm:$0xff]   ;;  %v4304_v11 = vld [vmem:[%s6211_s1 + $0x58] ss:$20 sps:$4 sm:$0xff]  }
   0x5   :  { %v4305_v12 = vld [vmem:[%s6211_s1 + $0x7c] ss:$20 sps:$4 sm:$0xff]   ;;  %v4307_v13 = vld [vmem:[%s6211_s1 + $0x84] ss:$20 sps:$4 sm:$0xff]   ;;  %v4310_v15 = vld [vmem:[%s6211_s1 + $0x80] ss:$20 sps:$4 sm:$0xff]  }
   0x6   :  { %v4309_v14 = vld [vmem:[%s6211_s1 + $0x78] ss:$20 sps:$4 sm:$0xff]   ;;  %v4315_v18 = vld [vmem:[%s6211_s1 + $0xa0] ss:$20 sps:$4 sm:$0xff]   ;;  %v4316_v19 = vld [vmem:[%s6211_s1 + $0xa8] ss:$20 sps:$4 sm:$0xff]  }
   0x7   :  { %1656 = vmatpush1.bf16.msra.mxu0 %v4297_v6  ;;  %1828 = vmatpush1.bf16.msra.mxu1 %v4298_v7  ;;  %v4311_v16 = vld [vmem:[%s6211_s1 + $0xa4] ss:$20 sps:$4 sm:$0xff]   ;;  %v4313_v17 = vld [vmem:[%s6211_s1 + $0xac] ss:$20 sps:$4 sm:$0xff]   ;;  %v4319_v21 = vld [vmem:[%s6211_s1 + $0xd4] ss:$20 sps:$4 sm:$0xff]  }
   0x8   :  { %1657 = vmatprep.subr.bf16.mxu0 %v4299_v8  ;;  %1829 = vmatprep.subr.bf16.mxu1 %v4301_v9  ;;  %v4317_v20 = vld [vmem:[%s6211_s1 + $0xcc] ss:$20 sps:$4 sm:$0xff]   ;;  %v4321_v22 = vld [vmem:[%s6211_s1 + $0xc8] ss:$20 sps:$4 sm:$0xff]   ;;  %v4322_v23 = vld [vmem:[%s6211_s1 + $0xd0] ss:$20 sps:$4 sm:$0xff]  }
   0x9   :  { %v4323_v24 = vld [vmem:[%s6211_s1 + $0xf4] ss:$20 sps:$4 sm:$0xff]   ;;  %v4325_v25 = vld [vmem:[%s6211_s1 + $0xfc] ss:$20 sps:$4 sm:$0xff]   ;;  %v4328_v27 = vld [vmem:[%s6211_s1 + $0xf8] ss:$20 sps:$4 sm:$0xff]  }
   0xa   :  { %v4327_v26 = vld [vmem:[%s6211_s1 + $0xf0] ss:$20 sps:$4 sm:$0xff]   ;;  %v4333_v30 = vld [vmem:[%s6211_s1 + $0x118] ss:$20 sps:$4 sm:$0xff]   ;;  %v4334_v31 = vld [vmem:[%s6211_s1 + $0x120] ss:$20 sps:$4 sm:$0xff]  }
   0xb   :  { %1658 = vmatpush1.bf16.msra.mxu0 %v4303_v10  ;;  %1830 = vmatpush1.bf16.msra.mxu1 %v4304_v11  ;;  %v4329_v28 = vld [vmem:[%s6211_s1 + $0x11c] ss:$20 sps:$4 sm:$0xff]   ;;  %v4331_v29 = vld [vmem:[%s6211_s1 + $0x124] ss:$20 sps:$4 sm:$0xff]   ;;  %v4337_v33 = vld [vmem:[%s6211_s1 + $0x14c] ss:$20 sps:$4 sm:$0xff]  }
   0xc   :  { %1659 = vmatprep.subr.bf16.mxu0 %v4305_v12  ;;  %1831 = vmatprep.subr.bf16.mxu1 %v4307_v13  ;;  %v4335_v32 = vld [vmem:[%s6211_s1 + $0x144] ss:$20 sps:$4 sm:$0xff]   ;;  %v4339_v34 = vld [vmem:[%s6211_s1 + $0x140] ss:$20 sps:$4 sm:$0xff]   ;;  %v4340_v35 = vld [vmem:[%s6211_s1 + $0x148] ss:$20 sps:$4 sm:$0xff]  }
   0xd   :  { %v4341_v36 = vld [vmem:[%s6211_s1 + $0x16c] ss:$20 sps:$4 sm:$0xff]   ;;  %v4343_v37 = vld [vmem:[%s6211_s1 + $0x174] ss:$20 sps:$4 sm:$0xff]   ;;  %v4346_v39 = vld [vmem:[%s6211_s1 + $0x170] ss:$20 sps:$4 sm:$0xff]  }
   0xe   :  { %v4345_v38 = vld [vmem:[%s6211_s1 + $0x168] ss:$20 sps:$4 sm:$0xff]   ;;  %v4351_v42 = vld [vmem:[%s6211_s1 + $0x190] ss:$20 sps:$4 sm:$0xff]   ;;  %v4352_v43 = vld [vmem:[%s6211_s1 + $0x198] ss:$20 sps:$4 sm:$0xff]  }
   0xf   :  { %1660 = vmatpush1.bf16.msra.mxu0 %v4309_v14  ;;  %1832 = vmatpush1.bf16.msra.mxu1 %v4310_v15  ;;  %v4347_v40 = vld [vmem:[%s6211_s1 + $0x194] ss:$20 sps:$4 sm:$0xff]   ;;  %v4349_v41 = vld [vmem:[%s6211_s1 + $0x19c] ss:$20 sps:$4 sm:$0xff]   ;;  %v4355_v45 = vld [vmem:[%s6211_s1 + $0x1c4] ss:$20 sps:$4 sm:$0xff]  }
  0x10   :  { %1661 = vmatprep.subr.bf16.mxu0 %v4311_v16  ;;  %1833 = vmatprep.subr.bf16.mxu1 %v4313_v17  ;;  %v4353_v44 = vld [vmem:[%s6211_s1 + $0x1bc] ss:$20 sps:$4 sm:$0xff]   ;;  %v34_v46 = vld [vmem:[%s6212_s0 + $0x8] sm:$0xff]  ;;  %v41_v47 = vld [vmem:[%s6212_s0 + $0x40] sm:$0xff] }
  0x11   :  { %v4357_v48 = vld [vmem:[%s6211_s1 + $0x1b8] ss:$20 sps:$4 sm:$0xff]   ;;  %v4358_v49 = vld [vmem:[%s6211_s1 + $0x1c0] ss:$20 sps:$4 sm:$0xff]   ;;  %v5025_v50 = vpack.c.bf16 %v41_v47, %v34_v46  ;;  %v4364_v54 = vld [vmem:[%s6211_s1 + $0x1e8] ss:$20 sps:$4 sm:$0xff]  }
  0x12   :  { %v4359_v51 = vld [vmem:[%s6211_s1 + $0x1e4] ss:$20 sps:$4 sm:$0xff]   ;;  %v4361_v52 = vld [vmem:[%s6211_s1 + $0x1ec] ss:$20 sps:$4 sm:$0xff]   ;;  %v4367_v56 = vld [vmem:[%s6211_s1 + $0x214] ss:$20 sps:$4 sm:$0xff]  }
  0x13   :  { %1662 = vmatpush1.bf16.msra.mxu0 %v4315_v18  ;;  %1834 = vmatpush1.bf16.msra.mxu1 %v4316_v19  ;;  %v4363_v53 = vld [vmem:[%s6211_s1 + $0x1e0] ss:$20 sps:$4 sm:$0xff]   ;;  %v4369_v57 = vld [vmem:[%s6211_s1 + $0x208] ss:$20 sps:$4 sm:$0xff]   ;;  %v4370_v58 = vld [vmem:[%s6211_s1 + $0x210] ss:$20 sps:$4 sm:$0xff]  }
  0x14   :  { %1663 = vmatprep.subr.bf16.mxu0 %v4317_v20  ;;  %1835 = vmatprep.subr.bf16.mxu1 %v4319_v21  ;;  %v4365_v55 = vld [vmem:[%s6211_s1 + $0x20c] ss:$20 sps:$4 sm:$0xff]   ;;  %v4371_v59 = vld [vmem:[%s6211_s1 + $0x234] ss:$20 sps:$4 sm:$0xff]   ;;  %v4373_v60 = vld [vmem:[%s6211_s1 + $0x23c] ss:$20 sps:$4 sm:$0xff]  }
  0x15   :  { %1685 = vmatprep.mubr.bf16.mxu0 %v5025_v50  ;;  %1857 = vmatprep.mubr.bf16.mxu1 %v5025_v50  ;;  %v4375_v61 = vld [vmem:[%s6211_s1 + $0x230] ss:$20 sps:$4 sm:$0xff]   ;;  %v4376_v62 = vld [vmem:[%s6211_s1 + $0x238] ss:$20 sps:$4 sm:$0xff]   ;;  %v4382_v2 = vld [vmem:[%s6211_s1 + $0x260] ss:$20 sps:$4 sm:$0xff]  }
  0x16   :  { %v4377_v63 = vld [vmem:[%s6211_s1 + $0x25c] ss:$20 sps:$4 sm:$0xff]   ;;  %v4379_v0 = vld [vmem:[%s6211_s1 + $0x264] ss:$20 sps:$4 sm:$0xff]   ;;  %v4388_v6 = vld [vmem:[%s6211_s1 + $0x28c] ss:$20 sps:$4 sm:$0xff]  }
  0x17   :  { %1664 = vmatpush1.bf16.msra.mxu0 %v4321_v22  ;;  %1836 = vmatpush1.bf16.msra.mxu1 %v4322_v23  ;;  %v4381_v1 = vld [vmem:[%s6211_s1 + $0x258] ss:$20 sps:$4 sm:$0xff]   ;;  %v33_v4 = vld [vmem:[%s6212_s0] sm:$0xff]  ;;  %v4386_v8 = vld [vmem:[%s6211_s1 + $0x288] ss:$20 sps:$4 sm:$0xff]  }
  0x18   :  { %1665 = vmatprep.subr.bf16.mxu0 %v4323_v24  ;;  %1837 = vmatprep.subr.bf16.mxu1 %v4325_v25  ;;  %v4385_v3 = vld [vmem:[%s6211_s1 + $0x284] ss:$20 sps:$4 sm:$0xff]   ;;  %v4383_v7 = vld [vmem:[%s6211_s1 + $0x280] ss:$20 sps:$4 sm:$0xff]   ;;  %v4389_v12 = vld [vmem:[%s6211_s1 + $0x2a8] ss:$20 sps:$4 sm:$0xff]  }
  0x19   :  { %v40_v5 = vld [vmem:[%s6212_s0 + $0x38] sm:$0xff]  ;;  %v4391_v10 = vld [vmem:[%s6211_s1 + $0x2ac] ss:$20 sps:$4 sm:$0xff]   ;;  %v4394_v11 = vld [vmem:[%s6211_s1 + $0x2b4] ss:$20 sps:$4 sm:$0xff]  }
  0x1a   :  { %v5095_v9 = vpack.c.bf16 %v40_v5, %v33_v4  ;;  %v4392_v13 = vld [vmem:[%s6211_s1 + $0x2b0] ss:$20 sps:$4 sm:$0xff]   ;;  %v4397_v14 = vld [vmem:[%s6211_s1 + $0x2d4] ss:$20 sps:$4 sm:$0xff]   ;;  %v4398_v17 = vld [vmem:[%s6211_s1 + $0x2d8] ss:$20 sps:$4 sm:$0xff]  }
  0x1b   :  { %1666 = vmatpush1.bf16.msra.mxu0 %v4327_v26  ;;  %1838 = vmatpush1.bf16.msra.mxu1 %v4328_v27  ;;  %v4400_v15 = vld [vmem:[%s6211_s1 + $0x2dc] ss:$20 sps:$4 sm:$0xff]   ;;  %v4406_v19 = vld [vmem:[%s6211_s1 + $0x304] ss:$20 sps:$4 sm:$0xff]   ;;  %v4404_v21 = vld [vmem:[%s6211_s1 + $0x300] ss:$20 sps:$4 sm:$0xff]  }
  0x1c   :  { %1667 = vmatprep.subr.bf16.mxu0 %v4329_v28  ;;  %1839 = vmatprep.subr.bf16.mxu1 %v4331_v29  ;;  %v4395_v16 = vld [vmem:[%s6211_s1 + $0x2d0] ss:$20 sps:$4 sm:$0xff]   ;;  %v4401_v20 = vld [vmem:[%s6211_s1 + $0x2f8] ss:$20 sps:$4 sm:$0xff]   ;;  %v4407_v24 = vld [vmem:[%s6211_s1 + $0x320] ss:$20 sps:$4 sm:$0xff]  }
  0x1d   :  { %v4403_v18 = vld [vmem:[%s6211_s1 + $0x2fc] ss:$20 sps:$4 sm:$0xff]   ;;  %v4409_v22 = vld [vmem:[%s6211_s1 + $0x324] ss:$20 sps:$4 sm:$0xff]   ;;  %v4412_v23 = vld [vmem:[%s6211_s1 + $0x32c] ss:$20 sps:$4 sm:$0xff]  }
  0x1e   :  { %v4410_v25 = vld [vmem:[%s6211_s1 + $0x328] ss:$20 sps:$4 sm:$0xff]   ;;  %v4415_v26 = vld [vmem:[%s6211_s1 + $0x34c] ss:$20 sps:$4 sm:$0xff]   ;;  %v4416_v29 = vld [vmem:[%s6211_s1 + $0x350] ss:$20 sps:$4 sm:$0xff]  }
  0x1f   :  { %1668 = vmatpush1.bf16.msra.mxu0 %v4333_v30  ;;  %1840 = vmatpush1.bf16.msra.mxu1 %v4334_v31  ;;  %v4418_v27 = vld [vmem:[%s6211_s1 + $0x354] ss:$20 sps:$4 sm:$0xff]   ;;  %v4424_v31 = vld [vmem:[%s6211_s1 + $0x37c] ss:$20 sps:$4 sm:$0xff]   ;;  %v4470_v5 = vld [vmem:[%s6211_s1 + $0x4b8] ss:$20 sps:$4 sm:$0xff]  }
  0x20   :  { %1669 = vmatprep.subr.bf16.mxu0 %v4335_v32  ;;  %1841 = vmatprep.subr.bf16.mxu1 %v4337_v33  ;;  %v4413_v28 = vld [vmem:[%s6211_s1 + $0x348] ss:$20 sps:$4 sm:$0xff]   ;;  %v43_v33 = vld [vmem:[%s6212_s0 + $0x50] sm:$0xff] }
  0x21   :  { %v4421_v30 = vld [vmem:[%s6211_s1 + $0x374] ss:$20 sps:$4 sm:$0xff]   ;;  %v36_v32 = vld [vmem:[%s6212_s0 + $0x18] sm:$0xff]  ;;  %v4467_v4 = vld [vmem:[%s6211_s1 + $0x4b0] ss:$20 sps:$4 sm:$0xff]  }
  0x22   :  { %v4442_v46 = vld [vmem:[%s6211_s1 + $0x3f4] ss:$20 sps:$4 sm:$0xff]  }
  0x23   :  { %1670 = vmatpush1.bf16.msra.mxu0 %v4339_v34  ;;  %1842 = vmatpush1.bf16.msra.mxu1 %v4340_v35  ;;  %v4419_v34 = vld [vmem:[%s6211_s1 + $0x370] ss:$20 sps:$4 sm:$0xff]   ;;  %v4422_v35 = vld [vmem:[%s6211_s1 + $0x378] ss:$20 sps:$4 sm:$0xff]   ;;  %v4437_v47 = vld [vmem:[%s6211_s1 + $0x3e8] ss:$20 sps:$4 sm:$0xff]  }
  0x24   :  { %1671 = vmatprep.subr.bf16.mxu0 %v4341_v36  ;;  %1843 = vmatprep.subr.bf16.mxu1 %v4343_v37  ;;  %v5177_v36 = vpack.c.bf16 %v43_v33, %v36_v32  ;;  %v4427_v37 = vld [vmem:[%s6211_s1 + $0x39c] ss:$20 sps:$4 sm:$0xff]   ;;  %v4500_v32 = vld [vmem:[%s6211_s1 + $0x580] ss:$20 sps:$4 sm:$0xff]   ;;  %v4505_v33 = vld [vmem:[%s6211_s1 + $0x5a4] ss:$20 sps:$4 sm:$0xff]  }
  0x27   :  { %1672 = vmatpush1.bf16.msra.mxu0 %v4345_v38  ;;  %1844 = vmatpush1.bf16.msra.mxu1 %v4346_v39  ;;  %v4430_v38 = vld [vmem:[%s6211_s1 + $0x3a4] ss:$20 sps:$4 sm:$0xff]  }
  0x28   :  { %1673 = vmatprep.subr.bf16.mxu0 %v4347_v40  ;;  %1845 = vmatprep.subr.bf16.mxu1 %v4349_v41  ;;  %v4425_v39 = vld [vmem:[%s6211_s1 + $0x398] ss:$20 sps:$4 sm:$0xff]   ;;  %v4428_v40 = vld [vmem:[%s6211_s1 + $0x3a0] ss:$20 sps:$4 sm:$0xff]  }
  0x29   :  { %v4433_v41 = vld [vmem:[%s6211_s1 + $0x3c4] ss:$20 sps:$4 sm:$0xff]  }
  0x2b   :  { %1674 = vmatpush1.bf16.msra.mxu0 %v4351_v42  ;;  %1846 = vmatpush1.bf16.msra.mxu1 %v4352_v43  ;;  %v4436_v42 = vld [vmem:[%s6211_s1 + $0x3cc] ss:$20 sps:$4 sm:$0xff]  }
  0x2c   :  { %1675 = vmatprep.subr.bf16.mxu0 %v4353_v44  ;;  %1847 = vmatprep.subr.bf16.mxu1 %v4355_v45  ;;  %v4431_v43 = vld [vmem:[%s6211_s1 + $0x3c0] ss:$20 sps:$4 sm:$0xff]   ;;  %v4434_v44 = vld [vmem:[%s6211_s1 + $0x3c8] ss:$20 sps:$4 sm:$0xff]  }
  0x2d   :  { %v4439_v45 = vld [vmem:[%s6211_s1 + $0x3ec] ss:$20 sps:$4 sm:$0xff]  }
  0x2f   :  { %1676 = vmatpush1.bf16.msra.mxu0 %v4357_v48  ;;  %1848 = vmatpush1.bf16.msra.mxu1 %v4358_v49  ;;  %v4440_v48 = vld [vmem:[%s6211_s1 + $0x3f0] ss:$20 sps:$4 sm:$0xff]   ;;  %v4445_v49 = vld [vmem:[%s6211_s1 + $0x414] ss:$20 sps:$4 sm:$0xff]  }
  0x30   :  { %1677 = vmatprep.subr.bf16.mxu0 %v4359_v51  ;;  %1849 = vmatprep.subr.bf16.mxu1 %v4361_v52  ;;  %v4448_v51 = vld [vmem:[%s6211_s1 + $0x41c] ss:$20 sps:$4 sm:$0xff]  }
  0x31   :  { %v4443_v52 = vld [vmem:[%s6211_s1 + $0x410] ss:$20 sps:$4 sm:$0xff]  }
  0x33   :  { %1678 = vmatpush1.bf16.msra.mxu0 %v4363_v53  ;;  %1850 = vmatpush1.bf16.msra.mxu1 %v4364_v54  ;;  %v4446_v53 = vld [vmem:[%s6211_s1 + $0x418] ss:$20 sps:$4 sm:$0xff]   ;;  %v4451_v54 = vld [vmem:[%s6211_s1 + $0x43c] ss:$20 sps:$4 sm:$0xff]  }
  0x34   :  { %1679 = vmatprep.subr.bf16.mxu0 %v4365_v55  ;;  %1851 = vmatprep.subr.bf16.mxu1 %v4367_v56  ;;  %v4454_v55 = vld [vmem:[%s6211_s1 + $0x444] ss:$20 sps:$4 sm:$0xff]  }
  0x35   :  { %v4449_v56 = vld [vmem:[%s6211_s1 + $0x438] ss:$20 sps:$4 sm:$0xff]  }
  0x37   :  { %1680 = vmatpush1.bf16.msra.mxu0 %v4369_v57  ;;  %1852 = vmatpush1.bf16.msra.mxu1 %v4370_v58  ;;  %v4452_v57 = vld [vmem:[%s6211_s1 + $0x440] ss:$20 sps:$4 sm:$0xff]   ;;  %v4457_v58 = vld [vmem:[%s6211_s1 + $0x464] ss:$20 sps:$4 sm:$0xff]  }
  0x38   :  { %1681 = vmatprep.subr.bf16.mxu0 %v4371_v59  ;;  %1853 = vmatprep.subr.bf16.mxu1 %v4373_v60  ;;  %v4460_v59 = vld [vmem:[%s6211_s1 + $0x46c] ss:$20 sps:$4 sm:$0xff]  }
  0x39   :  { %v4455_v60 = vld [vmem:[%s6211_s1 + $0x460] ss:$20 sps:$4 sm:$0xff]  }
  0x3b   :  { %1682 = vmatpush1.bf16.msra.mxu0 %v4375_v61  ;;  %1854 = vmatpush1.bf16.msra.mxu1 %v4376_v62  ;;  %v4458_v61 = vld [vmem:[%s6211_s1 + $0x468] ss:$20 sps:$4 sm:$0xff]   ;;  %v4463_v62 = vld [vmem:[%s6211_s1 + $0x48c] ss:$20 sps:$4 sm:$0xff]  }
  0x3c   :  { %1683 = vmatprep.subr.bf16.mxu0 %v4377_v63  ;;  %1855 = vmatprep.subr.bf16.mxu1 %v4379_v0  ;;  %v4466_v63 = vld [vmem:[%s6211_s1 + $0x494] ss:$20 sps:$4 sm:$0xff]  }
  0x3d   :  { %v4461_v0 = vld [vmem:[%s6211_s1 + $0x488] ss:$20 sps:$4 sm:$0xff]  }
  0x3f   :  { %1684 = vmatpush1.bf16.msra.mxu0 %v4381_v1  ;;  %1856 = vmatpush1.bf16.msra.mxu1 %v4382_v2  ;;  %v4464_v1 = vld [vmem:[%s6211_s1 + $0x490] ss:$20 sps:$4 sm:$0xff]   ;;  %v4469_v2 = vld [vmem:[%s6211_s1 + $0x4b4] ss:$20 sps:$4 sm:$0xff]  }
  0x40   :  { %1696 = vmatprep.subr.bf16.mxu0 %v4385_v3  ;;  %1868 = vmatprep.subr.bf16.mxu1 %v4388_v6  ;;  %v4472_v3 = vld [vmem:[%s6211_s1 + $0x4bc] ss:$20 sps:$4 sm:$0xff]  }
  0x41   :  { %v4475_v6 = vld [vmem:[%s6211_s1 + $0x4dc] ss:$20 sps:$4 sm:$0xff]  }
  0x42   :  { %1686 = vmatmul.mubr.bf16.vlgmr.msra.gmra.mrb[0].mxu0 %v5095_v9  ;;  %1858 = vmatmul.mubr.bf16.vlgmr.msra.gmra.mrb[0].mxu1 %v5095_v9 }
  0x43   :  { %1697 = vmatpush1.bf16.msra.mxu0 %v4383_v7  ;;  %1869 = vmatpush1.bf16.msra.mxu1 %v4386_v8  ;;  %v4478_v7 = vld [vmem:[%s6211_s1 + $0x4e4] ss:$20 sps:$4 sm:$0xff]  }
  0x44   :  { %1698 = vmatprep.subr.bf16.mxu0 %v4391_v10  ;;  %1870 = vmatprep.subr.bf16.mxu1 %v4394_v11  ;;  %v4473_v8 = vld [vmem:[%s6211_s1 + $0x4d8] ss:$20 sps:$4 sm:$0xff]   ;;  %v4476_v10 = vld [vmem:[%s6211_s1 + $0x4e0] ss:$20 sps:$4 sm:$0xff]  }
  0x45   :  { %1728 = vmatprep.mubr.bf16.mxu0 %v5177_v36  ;;  %1900 = vmatprep.mubr.bf16.mxu1 %v5177_v36  ;;  %v4481_v11 = vld [vmem:[%s6211_s1 + $0x504] ss:$20 sps:$4 sm:$0xff]  }
  0x47   :  { %1699 = vmatpush1.bf16.msra.mxu0 %v4389_v12  ;;  %1871 = vmatpush1.bf16.msra.mxu1 %v4392_v13  ;;  %v35_v12 = vld [vmem:[%s6212_s0 + $0x10] sm:$0xff]  ;;  %v42_v13 = vld [vmem:[%s6212_s0 + $0x48] sm:$0xff] }
  0x48   :  { %1700 = vmatprep.subr.bf16.mxu0 %v4397_v14  ;;  %1872 = vmatprep.subr.bf16.mxu1 %v4400_v15  ;;  %v4484_v14 = vld [vmem:[%s6211_s1 + $0x50c] ss:$20 sps:$4 sm:$0xff]  }
  0x49   :  { %v4479_v15 = vld [vmem:[%s6211_s1 + $0x500] ss:$20 sps:$4 sm:$0xff]  }
  0x4b   :  { %1701 = vmatpush1.bf16.msra.mxu0 %v4395_v16  ;;  %1873 = vmatpush1.bf16.msra.mxu1 %v4398_v17  ;;  %v4482_v16 = vld [vmem:[%s6211_s1 + $0x508] ss:$20 sps:$4 sm:$0xff]   ;;  %v5307_v17 = vpack.c.bf16 %v42_v13, %v35_v12 }
  0x4c   :  { %1702 = vmatprep.subr.bf16.mxu0 %v4403_v18  ;;  %1874 = vmatprep.subr.bf16.mxu1 %v4406_v19  ;;  %v4487_v18 = vld [vmem:[%s6211_s1 + $0x52c] ss:$20 sps:$4 sm:$0xff]   ;;  %v4490_v19 = vld [vmem:[%s6211_s1 + $0x534] ss:$20 sps:$4 sm:$0xff]   ;;  %v4568_v13 = vld [vmem:[%s6211_s1 + $0x73c] ss:$20 sps:$4 sm:$0xff]  }
  0x4d   :  { %v4565_v12 = vld [vmem:[%s6211_s1 + $0x734] ss:$20 sps:$4 sm:$0xff]  }
  0x4f   :  { %1703 = vmatpush1.bf16.msra.mxu0 %v4401_v20  ;;  %1875 = vmatpush1.bf16.msra.mxu1 %v4404_v21  ;;  %v38_v20 = vld [vmem:[%s6212_s0 + $0x28] sm:$0xff] }
  0x50   :  { %1704 = vmatprep.subr.bf16.mxu0 %v4409_v22  ;;  %1876 = vmatprep.subr.bf16.mxu1 %v4412_v23  ;;  %v4485_v21 = vld [vmem:[%s6211_s1 + $0x528] ss:$20 sps:$4 sm:$0xff]   ;;  %v4488_v22 = vld [vmem:[%s6211_s1 + $0x530] ss:$20 sps:$4 sm:$0xff]  }
  0x51   :  { %v45_v23 = vld [vmem:[%s6212_s0 + $0x60] sm:$0xff] }
  0x53   :  { %1705 = vmatpush1.bf16.msra.mxu0 %v4407_v24  ;;  %1877 = vmatpush1.bf16.msra.mxu1 %v4410_v25  ;;  %v4493_v24 = vld [vmem:[%s6211_s1 + $0x554] ss:$20 sps:$4 sm:$0xff]   ;;  %v5332_v25 = vpack.c.bf16 %v45_v23, %v38_v20  ;;  %v4577_v23 = vld [vmem:[%s6211_s1 + $0x784] ss:$20 sps:$4 sm:$0xff]  }
  0x54   :  { %1706 = vmatprep.subr.bf16.mxu0 %v4415_v26  ;;  %1878 = vmatprep.subr.bf16.mxu1 %v4418_v27  ;;  %v4496_v26 = vld [vmem:[%s6211_s1 + $0x55c] ss:$20 sps:$4 sm:$0xff]   ;;  %v4572_v20 = vld [vmem:[%s6211_s1 + $0x760] ss:$20 sps:$4 sm:$0xff]  }
  0x55   :  { %v4491_v27 = vld [vmem:[%s6211_s1 + $0x550] ss:$20 sps:$4 sm:$0xff]  }
  0x57   :  { %1707 = vmatpush1.bf16.msra.mxu0 %v4413_v28  ;;  %1879 = vmatpush1.bf16.msra.mxu1 %v4416_v29  ;;  %v4494_v28 = vld [vmem:[%s6211_s1 + $0x558] ss:$20 sps:$4 sm:$0xff]   ;;  %v4499_v29 = vld [vmem:[%s6211_s1 + $0x57c] ss:$20 sps:$4 sm:$0xff]  }
  0x58   :  { %1708 = vmatprep.subr.bf16.mxu0 %v4421_v30  ;;  %1880 = vmatprep.subr.bf16.mxu1 %v4424_v31  ;;  %v4502_v30 = vld [vmem:[%s6211_s1 + $0x584] ss:$20 sps:$4 sm:$0xff]  }
  0x59   :  { %v4497_v31 = vld [vmem:[%s6211_s1 + $0x578] ss:$20 sps:$4 sm:$0xff]  }
  0x5b   :  { %1709 = vmatpush1.bf16.msra.mxu0 %v4419_v34  ;;  %1881 = vmatpush1.bf16.msra.mxu1 %v4422_v35  ;;  %v4508_v34 = vld [vmem:[%s6211_s1 + $0x5ac] ss:$20 sps:$4 sm:$0xff]  }
  0x5c   :  { %1710 = vmatprep.subr.bf16.mxu0 %v4427_v37  ;;  %1882 = vmatprep.subr.bf16.mxu1 %v4430_v38  ;;  %v4503_v35 = vld [vmem:[%s6211_s1 + $0x5a0] ss:$20 sps:$4 sm:$0xff]   ;;  %v4506_v37 = vld [vmem:[%s6211_s1 + $0x5a8] ss:$20 sps:$4 sm:$0xff]  }
  0x5d   :  { %v4511_v38 = vld [vmem:[%s6211_s1 + $0x5cc] ss:$20 sps:$4 sm:$0xff]  }
  0x5f   :  { %1711 = vmatpush1.bf16.msra.mxu0 %v4425_v39  ;;  %1883 = vmatpush1.bf16.msra.mxu1 %v4428_v40  ;;  %v4514_v39 = vld [vmem:[%s6211_s1 + $0x5d4] ss:$20 sps:$4 sm:$0xff]  }
  0x60   :  { %1712 = vmatprep.subr.bf16.mxu0 %v4433_v41  ;;  %1884 = vmatprep.subr.bf16.mxu1 %v4436_v42  ;;  %v4509_v40 = vld [vmem:[%s6211_s1 + $0x5c8] ss:$20 sps:$4 sm:$0xff]   ;;  %v4512_v41 = vld [vmem:[%s6211_s1 + $0x5d0] ss:$20 sps:$4 sm:$0xff]  }
  0x61   :  { %v4517_v42 = vld [vmem:[%s6211_s1 + $0x5f4] ss:$20 sps:$4 sm:$0xff]  }
  0x63   :  { %1713 = vmatpush1.bf16.msra.mxu0 %v4431_v43  ;;  %1885 = vmatpush1.bf16.msra.mxu1 %v4434_v44  ;;  %v4520_v43 = vld [vmem:[%s6211_s1 + $0x5fc] ss:$20 sps:$4 sm:$0xff]  }
  0x64   :  { %1714 = vmatprep.subr.bf16.mxu0 %v4439_v45  ;;  %1886 = vmatprep.subr.bf16.mxu1 %v4442_v46  ;;  %v4515_v44 = vld [vmem:[%s6211_s1 + $0x5f0] ss:$20 sps:$4 sm:$0xff]   ;;  %v4518_v45 = vld [vmem:[%s6211_s1 + $0x5f8] ss:$20 sps:$4 sm:$0xff]  }
  0x65   :  { %v4523_v46 = vld [vmem:[%s6211_s1 + $0x61c] ss:$20 sps:$4 sm:$0xff]  }
  0x67   :  { %1715 = vmatpush1.bf16.msra.mxu0 %v4437_v47  ;;  %1887 = vmatpush1.bf16.msra.mxu1 %v4440_v48  ;;  %v4526_v47 = vld [vmem:[%s6211_s1 + $0x624] ss:$20 sps:$4 sm:$0xff]  }
  0x68   :  { %1716 = vmatprep.subr.bf16.mxu0 %v4445_v49  ;;  %1888 = vmatprep.subr.bf16.mxu1 %v4448_v51  ;;  %v4521_v48 = vld [vmem:[%s6211_s1 + $0x618] ss:$20 sps:$4 sm:$0xff]   ;;  %v4524_v49 = vld [vmem:[%s6211_s1 + $0x620] ss:$20 sps:$4 sm:$0xff]  }
  0x69   :  { %v4529_v51 = vld [vmem:[%s6211_s1 + $0x644] ss:$20 sps:$4 sm:$0xff]  }
  0x6b   :  { %1717 = vmatpush1.bf16.msra.mxu0 %v4443_v52  ;;  %1889 = vmatpush1.bf16.msra.mxu1 %v4446_v53  ;;  %v4532_v52 = vld [vmem:[%s6211_s1 + $0x64c] ss:$20 sps:$4 sm:$0xff]  }
  0x6c   :  { %1718 = vmatprep.subr.bf16.mxu0 %v4451_v54  ;;  %1890 = vmatprep.subr.bf16.mxu1 %v4454_v55  ;;  %v4527_v53 = vld [vmem:[%s6211_s1 + $0x640] ss:$20 sps:$4 sm:$0xff]   ;;  %v4530_v54 = vld [vmem:[%s6211_s1 + $0x648] ss:$20 sps:$4 sm:$0xff]  }
  0x6d   :  { %v4535_v55 = vld [vmem:[%s6211_s1 + $0x66c] ss:$20 sps:$4 sm:$0xff]  }
  0x6f   :  { %1719 = vmatpush1.bf16.msra.mxu0 %v4449_v56  ;;  %1891 = vmatpush1.bf16.msra.mxu1 %v4452_v57  ;;  %v4538_v56 = vld [vmem:[%s6211_s1 + $0x674] ss:$20 sps:$4 sm:$0xff]  }
  0x70   :  { %1720 = vmatprep.subr.bf16.mxu0 %v4457_v58  ;;  %1892 = vmatprep.subr.bf16.mxu1 %v4460_v59  ;;  %v4533_v57 = vld [vmem:[%s6211_s1 + $0x668] ss:$20 sps:$4 sm:$0xff]   ;;  %v4536_v58 = vld [vmem:[%s6211_s1 + $0x670] ss:$20 sps:$4 sm:$0xff]  }
  0x71   :  { %v4541_v59 = vld [vmem:[%s6211_s1 + $0x694] ss:$20 sps:$4 sm:$0xff]  }
  0x73   :  { %1721 = vmatpush1.bf16.msra.mxu0 %v4455_v60  ;;  %1893 = vmatpush1.bf16.msra.mxu1 %v4458_v61  ;;  %v4544_v60 = vld [vmem:[%s6211_s1 + $0x69c] ss:$20 sps:$4 sm:$0xff]  }
  0x74   :  { %1722 = vmatprep.subr.bf16.mxu0 %v4463_v62  ;;  %1894 = vmatprep.subr.bf16.mxu1 %v4466_v63  ;;  %v4539_v61 = vld [vmem:[%s6211_s1 + $0x690] ss:$20 sps:$4 sm:$0xff]   ;;  %v4542_v62 = vld [vmem:[%s6211_s1 + $0x698] ss:$20 sps:$4 sm:$0xff]  }
  0x75   :  { %v4547_v63 = vld [vmem:[%s6211_s1 + $0x6bc] ss:$20 sps:$4 sm:$0xff]  }
  0x77   :  { %1723 = vmatpush1.bf16.msra.mxu0 %v4461_v0  ;;  %1895 = vmatpush1.bf16.msra.mxu1 %v4464_v1  ;;  %v4550_v0 = vld [vmem:[%s6211_s1 + $0x6c4] ss:$20 sps:$4 sm:$0xff]  }
  0x78   :  { %1724 = vmatprep.subr.bf16.mxu0 %v4469_v2  ;;  %1896 = vmatprep.subr.bf16.mxu1 %v4472_v3  ;;  %v4545_v1 = vld [vmem:[%s6211_s1 + $0x6b8] ss:$20 sps:$4 sm:$0xff]   ;;  %v4548_v2 = vld [vmem:[%s6211_s1 + $0x6c0] ss:$20 sps:$4 sm:$0xff]  }
  0x79   :  { %v4553_v3 = vld [vmem:[%s6211_s1 + $0x6e4] ss:$20 sps:$4 sm:$0xff]  }
  0x7b   :  { %1725 = vmatpush1.bf16.msra.mxu0 %v4467_v4  ;;  %1897 = vmatpush1.bf16.msra.mxu1 %v4470_v5  ;;  %v4556_v4 = vld [vmem:[%s6211_s1 + $0x6ec] ss:$20 sps:$4 sm:$0xff]  }
  0x7c   :  { %1726 = vmatprep.subr.bf16.mxu0 %v4475_v6  ;;  %1898 = vmatprep.subr.bf16.mxu1 %v4478_v7  ;;  %v4551_v5 = vld [vmem:[%s6211_s1 + $0x6e0] ss:$20 sps:$4 sm:$0xff]   ;;  %v4554_v6 = vld [vmem:[%s6211_s1 + $0x6e8] ss:$20 sps:$4 sm:$0xff]  }
  0x7d   :  { %v4559_v7 = vld [vmem:[%s6211_s1 + $0x70c] ss:$20 sps:$4 sm:$0xff]  }
  0x7f   :  { %1727 = vmatpush1.bf16.msra.mxu0 %v4473_v8  ;;  %1899 = vmatpush1.bf16.msra.mxu1 %v4476_v10  ;;  %v4562_v8 = vld [vmem:[%s6211_s1 + $0x714] ss:$20 sps:$4 sm:$0xff]  }
  0x80   :  { %1739 = vmatprep.subr.bf16.mxu0 %v4481_v11  ;;  %1911 = vmatprep.subr.bf16.mxu1 %v4484_v14  ;;  %v4557_v10 = vld [vmem:[%s6211_s1 + $0x708] ss:$20 sps:$4 sm:$0xff]   ;;  %v4560_v11 = vld [vmem:[%s6211_s1 + $0x710] ss:$20 sps:$4 sm:$0xff]  }
  0x81   :  { %v4563_v14 = vld [vmem:[%s6211_s1 + $0x730] ss:$20 sps:$4 sm:$0xff]  }
  0x82   :  { %1729 = vmatmul.mubr.bf16.vlgmr.msra.gmra.mrb[0].mxu0 %v5307_v17  ;;  %1901 = vmatmul.mubr.bf16.vlgmr.msra.gmra.mrb[0].mxu1 %v5307_v17 }
  0x83   :  { %1740 = vmatpush1.bf16.msra.mxu0 %v4479_v15  ;;  %1912 = vmatpush1.bf16.msra.mxu1 %v4482_v16  ;;  %v4566_v15 = vld [vmem:[%s6211_s1 + $0x738] ss:$20 sps:$4 sm:$0xff]   ;;  %v4571_v16 = vld [vmem:[%s6211_s1 + $0x75c] ss:$20 sps:$4 sm:$0xff]  }
  0x84   :  { %1741 = vmatprep.subr.bf16.mxu0 %v4487_v18  ;;  %1913 = vmatprep.subr.bf16.mxu1 %v4490_v19  ;;  %v4574_v18 = vld [vmem:[%s6211_s1 + $0x764] ss:$20 sps:$4 sm:$0xff]  }
  0x85   :  { %1771 = vmatprep.mubr.bf16.mxu0 %v5332_v25  ;;  %1943 = vmatprep.mubr.bf16.mxu1 %v5332_v25  ;;  %v4569_v19 = vld [vmem:[%s6211_s1 + $0x758] ss:$20 sps:$4 sm:$0xff]  }
  0x87   :  { %1742 = vmatpush1.bf16.msra.mxu0 %v4485_v21  ;;  %1914 = vmatpush1.bf16.msra.mxu1 %v4488_v22  ;;  %v37_v21 = vld [vmem:[%s6212_s0 + $0x20] sm:$0xff]  ;;  %v44_v22 = vld [vmem:[%s6212_s0 + $0x58] sm:$0xff] }
  0x88   :  { %1743 = vmatprep.subr.bf16.mxu0 %v4493_v24  ;;  %1915 = vmatprep.subr.bf16.mxu1 %v4496_v26  ;;  %v4580_v24 = vld [vmem:[%s6211_s1 + $0x78c] ss:$20 sps:$4 sm:$0xff]   ;;  %v5513_v26 = vpack.c.bf16 %v44_v22, %v37_v21  ;;  %v4639_v21 = vld [vmem:[%s6213_s3 + $0x48] ss:$12 sps:$4 sm:$0xff]  }
  0x89   :  { %v4623_v22 = vld [vmem:[%s6211_s1 + $0x740] ss:$20 sps:$4 sm:$0xff]  }
  0x8b   :  { %1744 = vmatpush1.bf16.msra.mxu0 %v4491_v27  ;;  %1916 = vmatpush1.bf16.msra.mxu1 %v4494_v28  ;;  %v4575_v27 = vld [vmem:[%s6211_s1 + $0x780] ss:$20 sps:$4 sm:$0xff]   ;;  %v4578_v28 = vld [vmem:[%s6211_s1 + $0x788] ss:$20 sps:$4 sm:$0xff]  }
  0x8c   :  { %1745 = vmatprep.subr.bf16.mxu0 %v4499_v29  ;;  %1917 = vmatprep.subr.bf16.mxu1 %v4502_v30  ;;  %v4581_v29 = vld [vmem:[%s6211_s1 + $0x150] ss:$20 sps:$4 sm:$0xff]  }
  0x8d   :  { %v4597_v30 = vld [vmem:[%s6211_s1 + $0x3d0] ss:$20 sps:$4 sm:$0xff]  }
  0x8f   :  { %1746 = vmatpush1.bf16.msra.mxu0 %v4497_v31  ;;  %1918 = vmatpush1.bf16.msra.mxu1 %v4500_v32  ;;  %v4822_v31 = vmov 0   ;;  %v39_v32 = vld [vmem:[%s6212_s0 + $0x30] sm:$0xff] }
  0x90   :  { %1747 = vmatprep.subr.bf16.mxu0 %v4505_v33  ;;  %1919 = vmatprep.subr.bf16.mxu1 %v4508_v34  ;;  %v46_v33 = vld [vmem:[%s6212_s0 + $0x68] sm:$0xff] }
  0x91   :  { %v5537_v34 = vpack.c.bf16 %v46_v33, %v39_v32  ;;  %v4645_v32 = vld [vmem:[%s6213_s3 + $0x78] ss:$12 sps:$4 sm:$0xff]   ;;  %v4650_v33 = vld [vmem:[%s6213_s3 + $0x94] ss:$12 sps:$4 sm:$0xff]  }
  0x93   :  { %1748 = vmatpush1.bf16.msra.mxu0 %v4503_v35  ;;  %1920 = vmatpush1.bf16.msra.mxu1 %v4506_v37  ;;  %v4582_v35 = vld [vmem:[%s6211_s1 + $0x10] ss:$20 sps:$4 sm:$0xff]  }
  0x94   :  { %1749 = vmatprep.subr.bf16.mxu0 %v4511_v38  ;;  %1921 = vmatprep.subr.bf16.mxu1 %v4514_v39  ;;  %v4598_v37 = vld [vmem:[%s6211_s1 + $0x290] ss:$20 sps:$4 sm:$0xff]   ;;  %v4583_v38 = vld [vmem:[%s6211_s1 + $0x178] ss:$20 sps:$4 sm:$0xff]  }
  0x95   :  { %v4600_v39 = vld [vmem:[%s6211_s1 + $0x3f8] ss:$20 sps:$4 sm:$0xff]  }
  0x97   :  { %1750 = vmatpush1.bf16.msra.mxu0 %v4509_v40  ;;  %1922 = vmatpush1.bf16.msra.mxu1 %v4512_v41  ;;  %v4584_v40 = vld [vmem:[%s6211_s1 + $0x38] ss:$20 sps:$4 sm:$0xff]  }
  0x98   :  { %1751 = vmatprep.subr.bf16.mxu0 %v4517_v42  ;;  %1923 = vmatprep.subr.bf16.mxu1 %v4520_v43  ;;  %v4602_v41 = vld [vmem:[%s6211_s1 + $0x2b8] ss:$20 sps:$4 sm:$0xff]   ;;  %v4585_v42 = vld [vmem:[%s6211_s1 + $0x1a0] ss:$20 sps:$4 sm:$0xff]  }
  0x99   :  { %v4604_v43 = vld [vmem:[%s6211_s1 + $0x420] ss:$20 sps:$4 sm:$0xff]  }
  0x9b   :  { %1752 = vmatpush1.bf16.msra.mxu0 %v4515_v44  ;;  %1924 = vmatpush1.bf16.msra.mxu1 %v4518_v45  ;;  %v4586_v44 = vld [vmem:[%s6211_s1 + $0x60] ss:$20 sps:$4 sm:$0xff]   ;;  %v4587_v45 = vld [vmem:[%s6211_s1 + $0x1c8] ss:$20 sps:$4 sm:$0xff]  }
  0x9c   :  { %1753 = vmatprep.subr.bf16.mxu0 %v4523_v46  ;;  %1925 = vmatprep.subr.bf16.mxu1 %v4526_v47  ;;  %v4608_v46 = vld [vmem:[%s6211_s1 + $0x448] ss:$20 sps:$4 sm:$0xff]   ;;  %v4589_v47 = vld [vmem:[%s6211_s1 + $0x1f0] ss:$20 sps:$4 sm:$0xff]  }
  0x9f   :  { %1754 = vmatpush1.bf16.msra.mxu0 %v4521_v48  ;;  %1926 = vmatpush1.bf16.msra.mxu1 %v4524_v49  ;;  %v4610_v48 = vld [vmem:[%s6211_s1 + $0x308] ss:$20 sps:$4 sm:$0xff]   ;;  %v4612_v49 = vld [vmem:[%s6211_s1 + $0x470] ss:$20 sps:$4 sm:$0xff]  }
  0xa0   :  { %1755 = vmatprep.subr.bf16.mxu0 %v4529_v51  ;;  %1927 = vmatprep.subr.bf16.mxu1 %v4532_v52  ;;  %v4590_v51 = vld [vmem:[%s6211_s1 + $0xb0] ss:$20 sps:$4 sm:$0xff]  }
  0xa1   :  { %v4614_v52 = vld [vmem:[%s6211_s1 + $0x330] ss:$20 sps:$4 sm:$0xff]  }
  0xa3   :  { %1756 = vmatpush1.bf16.msra.mxu0 %v4527_v53  ;;  %1928 = vmatpush1.bf16.msra.mxu1 %v4530_v54  ;;  %v4591_v53 = vld [vmem:[%s6211_s1 + $0x218] ss:$20 sps:$4 sm:$0xff]  }
  0xa4   :  { %1757 = vmatprep.subr.bf16.mxu0 %v4535_v55  ;;  %1929 = vmatprep.subr.bf16.mxu1 %v4538_v56  ;;  %v4616_v54 = vld [vmem:[%s6211_s1 + $0x498] ss:$20 sps:$4 sm:$0xff]  }
  0xa5   :  { %v4592_v55 = vld [vmem:[%s6211_s1 + $0xd8] ss:$20 sps:$4 sm:$0xff]  }
  0xa6   :  { %v4618_v56 = vld [vmem:[%s6211_s1 + $0x358] ss:$20 sps:$4 sm:$0xff]  }
  0xa7   :  { %1758 = vmatpush1.bf16.msra.mxu0 %v4533_v57  ;;  %1930 = vmatpush1.bf16.msra.mxu1 %v4536_v58  ;;  %v4593_v57 = vld [vmem:[%s6211_s1 + $0x240] ss:$20 sps:$4 sm:$0xff]  }
  0xa8   :  { %1759 = vmatprep.subr.bf16.mxu0 %v4541_v59  ;;  %1931 = vmatprep.subr.bf16.mxu1 %v4544_v60  ;;  %v4620_v58 = vld [vmem:[%s6211_s1 + $0x4c0] ss:$20 sps:$4 sm:$0xff]  }
  0xa9   :  { %v4594_v59 = vld [vmem:[%s6211_s1 + $0x100] ss:$20 sps:$4 sm:$0xff]  }
  0xaa   :  { %v4622_v60 = vld [vmem:[%s6211_s1 + $0x380] ss:$20 sps:$4 sm:$0xff]  }
  0xab   :  { %1760 = vmatpush1.bf16.msra.mxu0 %v4539_v61  ;;  %1932 = vmatpush1.bf16.msra.mxu1 %v4542_v62  ;;  %v4595_v61 = vld [vmem:[%s6211_s1 + $0x268] ss:$20 sps:$4 sm:$0xff]  }
  0xac   :  { %1761 = vmatprep.subr.bf16.mxu0 %v4547_v63  ;;  %1933 = vmatprep.subr.bf16.mxu1 %v4550_v0  ;;  %v4624_v62 = vld [vmem:[%s6211_s1 + $0x4e8] ss:$20 sps:$4 sm:$0xff]  }
  0xad   :  { %v4596_v63 = vld [vmem:[%s6211_s1 + $0x128] ss:$20 sps:$4 sm:$0xff]  }
  0xae   :  { %v4626_v0 = vld [vmem:[%s6211_s1 + $0x3a8] ss:$20 sps:$4 sm:$0xff]  }
  0xaf   :  { %1762 = vmatpush1.bf16.msra.mxu0 %v4545_v1  ;;  %1934 = vmatpush1.bf16.msra.mxu1 %v4548_v2  ;;  %v4599_v1 = vld [vmem:[%s6211_s1 + $0x650] ss:$20 sps:$4 sm:$0xff]  }
  0xb0   :  { %1763 = vmatprep.subr.bf16.mxu0 %v4553_v3  ;;  %1935 = vmatprep.subr.bf16.mxu1 %v4556_v4  ;;  %v4601_v2 = vld [vmem:[%s6211_s1 + $0x510] ss:$20 sps:$4 sm:$0xff]   ;;  %v4603_v3 = vld [vmem:[%s6211_s1 + $0x678] ss:$20 sps:$4 sm:$0xff]  }
  0xb1   :  { %v4629_v4 = vld [vmem:[%s6211_s1 + $0x790] ss:$20 sps:$4 sm:$0xff]  }
  0xb3   :  { %1764 = vmatpush1.bf16.msra.mxu0 %v4551_v5  ;;  %1936 = vmatpush1.bf16.msra.mxu1 %v4554_v6  ;;  %v4632_v5 = vld [vmem:[%s6213_s3 + $0x4] ss:$12 sps:$4 sm:$0xff]   ;;  %v4823_v6 = vmov 0.0  }
  0xb4   :  { %1765 = vmatprep.subr.bf16.mxu0 %v4559_v7  ;;  %1937 = vmatprep.subr.bf16.mxu1 %v4562_v8  ;;  %v4605_v7 = vld [vmem:[%s6211_s1 + $0x538] ss:$20 sps:$4 sm:$0xff]   ;;  %v4607_v8 = vld [vmem:[%s6211_s1 + $0x6a0] ss:$20 sps:$4 sm:$0xff]  }
  0xb7   :  { %1766 = vmatpush1.bf16.msra.mxu0 %v4557_v10  ;;  %1938 = vmatpush1.bf16.msra.mxu1 %v4560_v11  ;;  %v4609_v10 = vld [vmem:[%s6211_s1 + $0x560] ss:$20 sps:$4 sm:$0xff]   ;;  %v4613_v11 = vld [vmem:[%s6211_s1 + $0x588] ss:$20 sps:$4 sm:$0xff]  }
  0xb8   :  { %1767 = vmatprep.subr.bf16.mxu0 %v4565_v12  ;;  %1939 = vmatprep.subr.bf16.mxu1 %v4568_v13  ;;  %v4633_v12 = vld [vmem:[%s6213_s3 + $0x18] ss:$12 sps:$4 sm:$0xff]  }
  0xb9   :  { %v4615_v13 = vld [vmem:[%s6211_s1 + $0x6f0] ss:$20 sps:$4 sm:$0xff]  }
  0xbb   :  { %1768 = vmatpush1.bf16.msra.mxu0 %v4563_v14  ;;  %1940 = vmatpush1.bf16.msra.mxu1 %v4566_v15  ;;  %v4638_v14 = vld [vmem:[%s6213_s3 + $0x34] ss:$12 sps:$4 sm:$0xff]   ;;  %v4617_v15 = vld [vmem:[%s6211_s1 + $0x5b0] ss:$20 sps:$4 sm:$0xff]  }
  0xbc   :  { %1769 = vmatprep.subr.bf16.mxu0 %v4571_v16  ;;  %1941 = vmatprep.subr.bf16.mxu1 %v4574_v18  ;;  %v4636_v16 = vld [vmem:[%s6213_s3 + $0x30] ss:$12 sps:$4 sm:$0xff]   ;;  %v4619_v18 = vld [vmem:[%s6211_s1 + $0x718] ss:$20 sps:$4 sm:$0xff]  }
  0xbf   :  { %1770 = vmatpush1.bf16.msra.mxu0 %v4569_v19  ;;  %1942 = vmatpush1.bf16.msra.mxu1 %v4572_v20  ;;  %v4641_v19 = vld [vmem:[%s6213_s3 + $0x4c] ss:$12 sps:$4 sm:$0xff]  }
  0xc0   :  { %1782 = vmatprep.subr.bf16.mxu0 %v4577_v23  ;;  %1954 = vmatprep.subr.bf16.mxu1 %v4580_v24  ;;  %v4621_v20 = vld [vmem:[%s6211_s1 + $0x5d8] ss:$20 sps:$4 sm:$0xff]   ;;  %v4644_v23 = vld [vmem:[%s6213_s3 + $0x64] ss:$12 sps:$4 sm:$0xff]   ;;  %v4625_v24 = vld [vmem:[%s6211_s1 + $0x600] ss:$20 sps:$4 sm:$0xff]  }
  0xc2   :  { %1772 = vmatmul.mubr.bf16.vlgmr.msra.gmra.mrb[0].mxu0 %v5513_v26  ;;  %1944 = vmatmul.mubr.bf16.vlgmr.msra.gmra.mrb[0].mxu1 %v5513_v26 }
  0xc3   :  { %1783 = vmatpush1.bf16.msra.mxu0 %v4575_v27  ;;  %1955 = vmatpush1.bf16.msra.mxu1 %v4578_v28  ;;  %v4642_v27 = vld [vmem:[%s6213_s3 + $0x60] ss:$12 sps:$4 sm:$0xff]   ;;  %v4627_v28 = vld [vmem:[%s6211_s1 + $0x768] ss:$20 sps:$4 sm:$0xff]  }
  0xc4   :  { %1814 = vmatprep.mubr.bf16.mxu0 %v4822_v31  ;;  %1986 = vmatprep.mubr.bf16.mxu1 %v4822_v31 }
  0xc5   :  { %4037 = vmatprep.subr.bf16.mxu0 %v4581_v29  ;;  %4059 = vmatprep.subr.bf16.mxu1 %v4597_v30  ;;  %v4647_v29 = vld [vmem:[%s6213_s3 + $0x7c] ss:$12 sps:$4 sm:$0xff]  }
  0xc6   :  { %v4628_v30 = vld [vmem:[%s6211_s1 + $0x628] ss:$20 sps:$4 sm:$0xff]  }
  0xce   :  { %3877 = vmatmul.mubr.msk.bf16.vlgmr.msra.gmra.mrb[0].mxu0 %vm1649_vm0, %v5537_v34  ;;  %3878 = vmatmul.mubr.msk.bf16.vlgmr.msra.gmra.mrb[0].mxu1 %vm1649_vm0, %v5537_v34 }
  0xcf   :  { %4038 = vmatpush3.bf16.msra.mxu0 %v4582_v35  ;;  %4060 = vmatpush3.bf16.msra.mxu1 %v4598_v37  ;;  %v4648_v35 = vld [vmem:[%s6213_s3 + $0x90] ss:$12 sps:$4 sm:$0xff]   ;;  %v4658_v37 = vld [vmem:[%s6213_s3 + $0x8] ss:$12 sps:$4 sm:$0xff]  }
  0xd0   :  { %4039 = vmatprep.subr.bf16.mxu0 %v4583_v38  ;;  %2029 = vmatprep.mubr.bf16.mxu0 %v5025_v50  ;;  %v4606_v50 = vld [vmem:[%s6211_s1 + $0x2e0] ss:$20 sps:$4 sm:$0xff]   ;;  %v4653_v38 = vld [vmem:[%s6213_s3 + $0xac] ss:$12 sps:$4 sm:$0xff]  }
  0xd1   :  { %4061 = vmatprep.subr.bf16.mxu1 %v4600_v39  ;;  %2070 = vmatprep.mubr.bf16.mxu1 %v5177_v36  ;;  %v4588_v36 = vld [vmem:[%s6211_s1 + $0x88] ss:$20 sps:$4 sm:$0xff]   ;;  %v4662_v39 = vld [vmem:[%s6213_s3 + $0xe0] ss:$12 sps:$4 sm:$0xff]  }
  0xd3   :  { %4040 = vmatpush3.bf16.msra.mxu0 %v4584_v40  ;;  %4062 = vmatpush3.bf16.msra.mxu1 %v4602_v41  ;;  %v4651_v40 = vld [vmem:[%s6213_s3 + $0xa8] ss:$12 sps:$4 sm:$0xff]   ;;  %v4663_v41 = vld [vmem:[%s6213_s3 + $0x20] ss:$12 sps:$4 sm:$0xff]  }
  0xd4   :  { %4041 = vmatprep.subr.bf16.mxu0 %v4585_v42  ;;  %4063 = vmatprep.subr.bf16.mxu1 %v4604_v43  ;;  %v4656_v42 = vld [vmem:[%s6213_s3 + $0xc4] ss:$12 sps:$4 sm:$0xff]   ;;  %v4654_v43 = vld [vmem:[%s6213_s3 + $0xc0] ss:$12 sps:$4 sm:$0xff]  }
  0xd7   :  { %4042 = vmatpush3.bf16.msra.mxu0 %v4586_v44  ;;  %4064 = vmatpush3.bf16.msra.mxu1 %v4606_v50  ;;  %v4668_v44 = vld [vmem:[%s6213_s3 + $0x38] ss:$12 sps:$4 sm:$0xff]   ;;  %v4672_v50 = vld [vmem:[%s6213_s3 + $0x110] ss:$12 sps:$4 sm:$0xff]  }
  0xd8   :  { %4043 = vmatprep.subr.bf16.mxu0 %v4587_v45  ;;  %4065 = vmatprep.subr.bf16.mxu1 %v4608_v46  ;;  %v4661_v45 = vld [vmem:[%s6213_s3 + $0xdc] ss:$12 sps:$4 sm:$0xff]   ;;  %v4659_v46 = vld [vmem:[%s6213_s3 + $0xd8] ss:$12 sps:$4 sm:$0xff]  }
  0xdb   :  { %4044 = vmatpush3.bf16.msra.mxu0 %v4588_v36  ;;  %4066 = vmatpush3.bf16.msra.mxu1 %v4610_v48  ;;  %v4673_v36 = vld [vmem:[%s6213_s3 + $0x50] ss:$12 sps:$4 sm:$0xff]   ;;  %v4677_v48 = vld [vmem:[%s6213_s3 + $0x128] ss:$12 sps:$4 sm:$0xff]  }
  0xdc   :  { %4045 = vmatprep.subr.bf16.mxu0 %v4589_v47  ;;  %4067 = vmatprep.subr.bf16.mxu1 %v4612_v49  ;;  %v4666_v47 = vld [vmem:[%s6213_s3 + $0xf4] ss:$12 sps:$4 sm:$0xff]   ;;  %v4664_v49 = vld [vmem:[%s6213_s3 + $0xf0] ss:$12 sps:$4 sm:$0xff]  }
  0xdf   :  { %4046 = vmatpush3.bf16.msra.mxu0 %v4590_v51  ;;  %4068 = vmatpush3.bf16.msra.mxu1 %v4614_v52  ;;  %v4678_v51 = vld [vmem:[%s6213_s3 + $0x68] ss:$12 sps:$4 sm:$0xff]   ;;  %v4671_v52 = vld [vmem:[%s6213_s3 + $0x10c] ss:$12 sps:$4 sm:$0xff]  }
  0xe0   :  { %4047 = vmatprep.subr.bf16.mxu0 %v4591_v53  ;;  %4069 = vmatprep.subr.bf16.mxu1 %v4616_v54  ;;  %v4682_v53 = vld [vmem:[%s6213_s3 + $0x140] ss:$12 sps:$4 sm:$0xff]   ;;  %v4669_v54 = vld [vmem:[%s6213_s3 + $0x108] ss:$12 sps:$4 sm:$0xff]  }
  0xe3   :  { %4048 = vmatpush3.bf16.msra.mxu0 %v4592_v55  ;;  %4070 = vmatpush3.bf16.msra.mxu1 %v4618_v56  ;;  %v4683_v55 = vld [vmem:[%s6213_s3 + $0x80] ss:$12 sps:$4 sm:$0xff]   ;;  %v4676_v56 = vld [vmem:[%s6213_s3 + $0x124] ss:$12 sps:$4 sm:$0xff]  }
  0xe4   :  { %4049 = vmatprep.subr.bf16.mxu0 %v4593_v57  ;;  %4071 = vmatprep.subr.bf16.mxu1 %v4620_v58  ;;  %v4687_v57 = vld [vmem:[%s6213_s3 + $0x158] ss:$12 sps:$4 sm:$0xff]   ;;  %v4674_v58 = vld [vmem:[%s6213_s3 + $0x120] ss:$12 sps:$4 sm:$0xff]  }
  0xe7   :  { %4050 = vmatpush3.bf16.msra.mxu0 %v4594_v59  ;;  %4072 = vmatpush3.bf16.msra.mxu1 %v4622_v60  ;;  %v4688_v59 = vld [vmem:[%s6213_s3 + $0x98] ss:$12 sps:$4 sm:$0xff]   ;;  %v4681_v60 = vld [vmem:[%s6213_s3 + $0x13c] ss:$12 sps:$4 sm:$0xff]  }
  0xe8   :  { %4051 = vmatprep.subr.bf16.mxu0 %v4595_v61  ;;  %4073 = vmatprep.subr.bf16.mxu1 %v4624_v62  ;;  %v4692_v61 = vld [vmem:[%s6213_s3 + $0x170] ss:$12 sps:$4 sm:$0xff]   ;;  %v4679_v62 = vld [vmem:[%s6213_s3 + $0x138] ss:$12 sps:$4 sm:$0xff]  }
  0xeb   :  { %4052 = vmatpush3.bf16.msra.mxu0 %v4596_v63  ;;  %4074 = vmatpush3.bf16.msra.mxu1 %v4626_v0  ;;  %v4693_v63 = vld [vmem:[%s6213_s3 + $0xb0] ss:$12 sps:$4 sm:$0xff]   ;;  %v4686_v0 = vld [vmem:[%s6213_s3 + $0x154] ss:$12 sps:$4 sm:$0xff]  }
  0xec   :  { %4081 = vmatprep.subr.bf16.mxu0 %v4599_v1  ;;  %4190 = vmatprep.subr.bf16.mxu1 %v4823_v6  ;;  %v4697_v1 = vld [vmem:[%s6213_s3 + $0x248] ss:$12 sps:$4 sm:$0xff]  }
  0xee   :  { %2030 = vmatmul.mubr.bf16.vlgmr.msra.gmra.mrb[4].mxu0 %v5095_v9  ;;  %2071 = vmatmul.mubr.bf16.vlgmr.msra.gmra.mrb[4].mxu1 %v5307_v17  ;;  %v4630_v9 = vld [vmem:[%s6213_s3] ss:$12 sps:$4 sm:$0xff]   ;;  %v4611_v17 = vld [vmem:[%s6211_s1 + $0x6c8] ss:$20 sps:$4 sm:$0xff]  }
  0xef   :  { %4082 = vmatpush3.bf16.msra.mxu0 %v4601_v2  ;;  %2111 = vmatprep.mubr.bf16.mxu0 %v5332_v25  ;;  %v4635_v25 = vld [vmem:[%s6213_s3 + $0x1c] ss:$12 sps:$4 sm:$0xff]  }
  0xf0   :  { %4083 = vmatprep.subr.bf16.mxu0 %v4603_v3  ;;  %4191 = vmatpush3.bf16.msra.mxu1 %v4629_v4  ;;  %v4684_v2 = vld [vmem:[%s6213_s3 + $0x150] ss:$12 sps:$4 sm:$0xff]   ;;  %v4691_v3 = vld [vmem:[%s6213_s3 + $0x16c] ss:$12 sps:$4 sm:$0xff]   ;;  %v4689_v4 = vld [vmem:[%s6213_s3 + $0x168] ss:$12 sps:$4 sm:$0xff]  }
  0xf1   :  { %4192 = vmatprep.mubr.msk.bf16.mxu1 %vm4824_vm1, %v4823_v6  ;;  %2993 = vmatprep.subr.bf16.mxu1 %v4632_v5  ;;  %v4696_v5 = vld [vmem:[%s6213_s3 + $0x184] ss:$12 sps:$4 sm:$0xff]  }
  0xf3   :  { %4084 = vmatpush3.bf16.msra.mxu0 %v4605_v7  ;;  %v350_v7 = vlaneseq }
  0xf4   :  { %4085 = vmatprep.subr.bf16.mxu0 %v4607_v8 }
  0xf5   :  { %v5846_v8 = vshrl.u32 %v350_v7, 7 }
  0xf6   :  { %4193 = vmatmul.mubr.msk.bf16.vlgmr.msra.gmra.mrb[8].mxu1 %vm1649_vm0, %v5537_v34  ;;  %v4657_v34 = vld [vmem:[%s6213_s3 + $0xc8] ss:$12 sps:$4 sm:$0xff]  }
  0xf7   :  { %4086 = vmatpush3.bf16.msra.mxu0 %v4609_v10  ;;  %2994 = vmatpush1.bf16.msra.mxu1 %v4630_v9  ;;  %v352_v10 = vsub.s32 0, %v5846_v8  ;;  %v360_v9 = vsub.s32 2, %v5846_v8 }
  0xf8   :  { %4087 = vmatprep.subr.bf16.mxu0 %v4611_v17  ;;  %2995 = vmatprep.subr.bf16.mxu1 %v4635_v25  ;;  %v5853_v17 = vld [vmem:[%s6214_s2] sm:$0x1f]  ;;  %v356_v25 = vsub.s32 1, %v5846_v8 }
  0xfb   :  { %4088 = vmatpush3.bf16.msra.mxu0 %v4613_v11  ;;  %2996 = vmatpush1.bf16.msra.mxu1 %v4633_v12  ;;  %v364_v11 = vsub.s32 3, %v5846_v8  ;;  %v353_v12 = vrot.slane %v5853_v17, %v352_v10 }
  0xfc   :  { %4089 = vmatprep.subr.bf16.mxu0 %v4615_v13  ;;  %2997 = vmatprep.subr.bf16.mxu1 %v4638_v14  ;;  %v361_v13 = vrot.slane %v5853_v17, %v360_v9  ;;  %v357_v14 = vrot.slane %v5853_v17, %v356_v25 }
  0xff   :  { %4090 = vmatpush3.bf16.msra.mxu0 %v4617_v15  ;;  %2998 = vmatpush1.bf16.msra.mxu1 %v4636_v16  ;;  %v365_v15 = vrot.slane %v5853_v17, %v364_v11  ;;  %v4726_v11 = vld [vmem:[%s6213_s3 + $0x214] ss:$12 sps:$4 sm:$0xff]  }
 0x100   :  { %4091 = vmatprep.subr.bf16.mxu0 %v4619_v18  ;;  %2999 = vmatprep.subr.bf16.mxu1 %v4641_v19 }
 0x103   :  { %4092 = vmatpush3.bf16.msra.mxu0 %v4621_v20  ;;  %3000 = vmatpush1.bf16.msra.mxu1 %v4639_v21 }
 0x104   :  { %4093 = vmatprep.subr.bf16.mxu0 %v4623_v22  ;;  %3001 = vmatprep.subr.bf16.mxu1 %v4644_v23 }
 0x107   :  { %4094 = vmatpush3.bf16.msra.mxu0 %v4625_v24  ;;  %3002 = vmatpush1.bf16.msra.mxu1 %v4642_v27 }
 0x108   :  { %4095 = vmatprep.subr.bf16.mxu0 %v4627_v28  ;;  %3003 = vmatprep.subr.bf16.mxu1 %v4647_v29 }
 0x10b   :  { %4096 = vmatpush3.bf16.msra.mxu0 %v4628_v30  ;;  %3004 = vmatpush1.bf16.msra.mxu1 %v4645_v32 }
 0x10c   :  { %3005 = vmatprep.subr.bf16.mxu1 %v4650_v33  ;;  %4105 = vmatprep.subr.bf16.mxu0 %v4657_v34 }
 0x10e   :  { %2112 = vmatmul.mubr.bf16.vlgmr.msra.gmra.mrb[8].mxu0 %v5513_v26  ;;  %v4667_v26 = vld [vmem:[%s6213_s3 + $0xf8] ss:$12 sps:$4 sm:$0xff]  }
 0x10f   :  { %3006 = vmatpush1.bf16.msra.mxu1 %v4648_v35  ;;  %4106 = vmatpush3.bf16.msra.mxu0 %v4658_v37 }
 0x110   :  { %3007 = vmatprep.subr.bf16.mxu1 %v4653_v38  ;;  %4107 = vmatprep.subr.bf16.mxu0 %v4662_v39 }
 0x113   :  { %3008 = vmatpush1.bf16.msra.mxu1 %v4651_v40  ;;  %4108 = vmatpush3.bf16.msra.mxu0 %v4663_v41 }
 0x114   :  { %3009 = vmatprep.subr.bf16.mxu1 %v4656_v42  ;;  %4109 = vmatprep.subr.bf16.mxu0 %v4667_v26 }
 0x117   :  { %3010 = vmatpush1.bf16.msra.mxu1 %v4654_v43  ;;  %4110 = vmatpush3.bf16.msra.mxu0 %v4668_v44 }
 0x118   :  { %3011 = vmatprep.subr.bf16.mxu1 %v4661_v45  ;;  %4111 = vmatprep.subr.bf16.mxu0 %v4672_v50 }
 0x11b   :  { %3012 = vmatpush1.bf16.msra.mxu1 %v4659_v46  ;;  %4112 = vmatpush3.bf16.msra.mxu0 %v4673_v36  ;;  %v4694_v36 = vld [vmem:[%s6213_s3 + $0x180] ss:$12 sps:$4 sm:$0xff]  }
 0x11c   :  { %3013 = vmatprep.subr.bf16.mxu1 %v4666_v47  ;;  %4113 = vmatprep.subr.bf16.mxu0 %v4677_v48  ;;  %v4698_v47 = vld [vmem:[%s6213_s3 + $0x188] ss:$12 sps:$4 sm:$0xff]  }
 0x11d   :  { %v4701_v48 = vld [vmem:[%s6213_s3 + $0x19c] ss:$12 sps:$4 sm:$0xff]  }
 0x11f   :  { %3014 = vmatpush1.bf16.msra.mxu1 %v4664_v49  ;;  %4114 = vmatpush3.bf16.msra.mxu0 %v4678_v51  ;;  %v4702_v49 = vld [vmem:[%s6213_s3 + $0x260] ss:$12 sps:$4 sm:$0xff]   ;;  %v4699_v51 = vld [vmem:[%s6213_s3 + $0x198] ss:$12 sps:$4 sm:$0xff]  }
 0x120   :  { %3015 = vmatprep.subr.bf16.mxu1 %v4671_v52  ;;  %4115 = vmatprep.subr.bf16.mxu0 %v4682_v53  ;;  %v4703_v52 = vld [vmem:[%s6213_s3 + $0x1a0] ss:$12 sps:$4 sm:$0xff]  }
 0x121   :  { %v4706_v53 = vld [vmem:[%s6213_s3 + $0x1b4] ss:$12 sps:$4 sm:$0xff]  }
 0x123   :  { %3016 = vmatpush1.bf16.msra.mxu1 %v4669_v54  ;;  %4116 = vmatpush3.bf16.msra.mxu0 %v4683_v55  ;;  %v4707_v54 = vld [vmem:[%s6213_s3 + $0x278] ss:$12 sps:$4 sm:$0xff]   ;;  %v4704_v55 = vld [vmem:[%s6213_s3 + $0x1b0] ss:$12 sps:$4 sm:$0xff]  }
 0x124   :  { %3017 = vmatprep.subr.bf16.mxu1 %v4676_v56  ;;  %4117 = vmatprep.subr.bf16.mxu0 %v4687_v57  ;;  %v4708_v56 = vld [vmem:[%s6213_s3 + $0x1b8] ss:$12 sps:$4 sm:$0xff]  }
 0x125   :  { %v4711_v57 = vld [vmem:[%s6213_s3 + $0x1cc] ss:$12 sps:$4 sm:$0xff]  }
 0x127   :  { %3018 = vmatpush1.bf16.msra.mxu1 %v4674_v58  ;;  %4118 = vmatpush3.bf16.msra.mxu0 %v4688_v59  ;;  %v4712_v58 = vld [vmem:[%s6213_s3 + $0x290] ss:$12 sps:$4 sm:$0xff]   ;;  %v4709_v59 = vld [vmem:[%s6213_s3 + $0x1c8] ss:$12 sps:$4 sm:$0xff]  }
 0x128   :  { %3019 = vmatprep.subr.bf16.mxu1 %v4681_v60  ;;  %4119 = vmatprep.subr.bf16.mxu0 %v4692_v61  ;;  %v4713_v60 = vld [vmem:[%s6213_s3 + $0x1d0] ss:$12 sps:$4 sm:$0xff]  }
 0x129   :  { %v4716_v61 = vld [vmem:[%s6213_s3 + $0x1e4] ss:$12 sps:$4 sm:$0xff]  }
 0x12b   :  { %3020 = vmatpush1.bf16.msra.mxu1 %v4679_v62  ;;  %4120 = vmatpush3.bf16.msra.mxu0 %v4693_v63  ;;  %v4717_v62 = vld [vmem:[%s6213_s3 + $0x2a8] ss:$12 sps:$4 sm:$0xff]   ;;  %v4714_v63 = vld [vmem:[%s6213_s3 + $0x1e0] ss:$12 sps:$4 sm:$0xff]  }
 0x12c   :  { %3021 = vmatprep.subr.bf16.mxu1 %v4686_v0  ;;  %4127 = vmatprep.subr.bf16.mxu0 %v4697_v1  ;;  %v4718_v0 = vld [vmem:[%s6213_s3 + $0x1e8] ss:$12 sps:$4 sm:$0xff]  }
 0x12d   :  { %v4721_v1 = vld [vmem:[%s6213_s3 + $0x1fc] ss:$12 sps:$4 sm:$0xff]  }
 0x12f   :  { %3022 = vmatpush1.bf16.msra.mxu1 %v4684_v2  ;;  %v4722_v2 = vld [vmem:[%s6213_s3 + $0x2c0] ss:$12 sps:$4 sm:$0xff]  }
 0x130   :  { %3023 = vmatprep.subr.bf16.mxu1 %v4691_v3  ;;  %v4719_v3 = vld [vmem:[%s6213_s3 + $0x1f8] ss:$12 sps:$4 sm:$0xff]  }
 0x133   :  { %3024 = vmatpush1.bf16.msra.mxu1 %v4689_v4  ;;  %v4723_v4 = vld [vmem:[%s6213_s3 + $0x200] ss:$12 sps:$4 sm:$0xff]  }
 0x134   :  { %3036 = vmatprep.subr.bf16.mxu1 %v4696_v5  ;;  %v368_v5 = vsub.s32 4, %v5846_v8  ;;  %v4807_v8 = vld [vmem:[%s6215_s5 + $0x88] sm:$0xff]  }
 0x1a1   :  { %v1816_v16 = vpop.f32.mrb[0].mxu0  ;;  %v1988_v18 = vpop.f32.mrb[0].mxu1 }
 0x1a2   :  { %v4240_v19 = vadd.f32 %v1816_v16, %v353_v12  ;;  %v4244_v20 = vadd.f32 %v1988_v18, %v361_v13  ;;  %v1818_v21 = vpop.f32.mrb[1].mxu0  ;;  %v1990_v22 = vpop.f32.mrb[1].mxu1  ;;  %v369_v16 = vrot.slane %v5853_v17, %v368_v5  ;;  %v4729_v17 = vld [vmem:[%s6213_s3 + $0x228] ss:$12 sps:$4 sm:$0xff]  }
 0x1a3   :  { %v4241_v23 = vadd.f32 %v1818_v21, %v357_v14  ;;  %v4245_v24 = vadd.f32 %v1990_v22, %v365_v15  ;;  %v1820_v27 = vpop.f32.mrb[2].mxu0  ;;  %v1992_v28 = vpop.f32.mrb[2].mxu1 }
 0x1a4   :  { %v4242_v29 = vadd.f32 %v1820_v27, %v353_v12  ;;  %v4246_v30 = vadd.f32 %v1992_v28, %v361_v13  ;;  %v1822_v32 = vpop.f32.mrb[3].mxu0  ;;  %v1994_v33 = vpop.f32.mrb[3].mxu1  ;;  %v2161_v37 = vmax.f32 %v4240_v19, 0.0  ;;  %v2163_v38 = vmax.f32 %v4244_v20, 0.0  ;;  %v4727_v12 = vld [vmem:[%s6213_s3 + $0x2d8] ss:$12 sps:$4 sm:$0xff]  }
 0x1a5   :  { %v4243_v34 = vadd.f32 %v1822_v32, %v357_v14  ;;  %v4247_v35 = vadd.f32 %v1994_v33, %v365_v15  ;;  %v2162_v41 = vmax.f32 %v4241_v23, 0.0  ;;  %v2164_v42 = vmax.f32 %v4245_v24, 0.0  ;;  %v4724_v13 = vld [vmem:[%s6213_s3 + $0x210] ss:$12 sps:$4 sm:$0xff]   ;;  %v4728_v14 = vld [vmem:[%s6213_s3 + $0x218] ss:$12 sps:$4 sm:$0xff]  }
 0x1a6   :  { %v2166_v39 = vmax.f32 %v4242_v29, 0.0  ;;  %v2168_v40 = vmax.f32 %v4246_v30, 0.0  ;;  %v4731_v19 = vld [vmem:[%s6213_s3 + $0x22c] ss:$12 sps:$4 sm:$0xff]   ;;  %v4732_v20 = vld [vmem:[%s6213_s3 + $0x2f0] ss:$12 sps:$4 sm:$0xff]  }
 0x1a7   :  { %v2167_v26 = vmax.f32 %v4243_v34, 0.0  ;;  %v2169_v43 = vmax.f32 %v4247_v35, 0.0  ;;  %v4733_v32 = vld [vmem:[%s6213_s3 + $0x230] ss:$12 sps:$4 sm:$0xff]  }
 0x1a8   :  { %v2171_v44 = vpack.c.bf16 %v2166_v39, %v2161_v37  ;;  %v5867_v45 = vpack.c.bf16 %v2168_v40, %v2163_v38  ;;  %v4736_v37 = vld [vmem:[%s6213_s3 + $0x244] ss:$12 sps:$4 sm:$0xff]   ;;  %v4734_v40 = vld [vmem:[%s6213_s3 + $0x240] ss:$12 sps:$4 sm:$0xff]  }
 0x1a9   :  { %v2172_v50 = vpack.c.bf16 %v2167_v26, %v2162_v41  ;;  %v2174_v46 = vpack.c.bf16 %v2169_v43, %v2164_v42  ;;  %v4740_v41 = vld [vmem:[%s6213_s3 + $0x308] ss:$12 sps:$4 sm:$0xff]  }
 0x1aa   :  { %v4739_v43 = vld [vmem:[%s6213_s3 + $0x25c] ss:$12 sps:$4 sm:$0xff]  }
 0x1ab   :  { %3025 = vmatprep.mubr.bf16.mxu1 %v2172_v50  ;;  %3154 = vmatprep.mubr.bf16.mxu0 %v2172_v50 }
 0x1ac   :  { %3026 = vmatmul.mubr.bf16.vlgmr.msra.gmra.mrb[12].mxu1 %v2171_v44  ;;  %3155 = vmatmul.mubr.bf16.vlgmr.msra.gmra.mrb[12].mxu0 %v2171_v44 }
 0x1ad   :  { %3037 = vmatpush1.bf16.msra.mxu1 %v4694_v36  ;;  %4128 = vmatpush3.bf16.msra.mxu0 %v4698_v47  ;;  %v4737_v36 = vld [vmem:[%s6213_s3 + $0x258] ss:$12 sps:$4 sm:$0xff]   ;;  %v4744_v47 = vld [vmem:[%s6213_s3 + $0x320] ss:$12 sps:$4 sm:$0xff]  }
 0x1ae   :  { %3068 = vmatprep.mubr.bf16.mxu1 %v2174_v46  ;;  %3195 = vmatprep.mubr.bf16.mxu0 %v2174_v46 }
 0x1af   :  { %3038 = vmatprep.subr.bf16.mxu1 %v4701_v48  ;;  %4129 = vmatprep.subr.bf16.mxu0 %v4702_v49  ;;  %v4743_v48 = vld [vmem:[%s6213_s3 + $0x274] ss:$12 sps:$4 sm:$0xff]   ;;  %v4741_v49 = vld [vmem:[%s6213_s3 + $0x270] ss:$12 sps:$4 sm:$0xff]  }
 0x1b1   :  { %3039 = vmatpush1.bf16.msra.mxu1 %v4699_v51  ;;  %4130 = vmatpush3.bf16.msra.mxu0 %v4703_v52  ;;  %v4748_v51 = vld [vmem:[%s6213_s3 + $0x338] ss:$12 sps:$4 sm:$0xff]  }
 0x1b2   :  { %3040 = vmatprep.subr.bf16.mxu1 %v4706_v53  ;;  %4131 = vmatprep.subr.bf16.mxu0 %v4707_v54  ;;  %v4747_v52 = vld [vmem:[%s6213_s3 + $0x28c] ss:$12 sps:$4 sm:$0xff]   ;;  %v4745_v53 = vld [vmem:[%s6213_s3 + $0x288] ss:$12 sps:$4 sm:$0xff]   ;;  %v4752_v54 = vld [vmem:[%s6213_s3 + $0x350] ss:$12 sps:$4 sm:$0xff]  }
 0x1b5   :  { %3041 = vmatpush1.bf16.msra.mxu1 %v4704_v55  ;;  %4132 = vmatpush3.bf16.msra.mxu0 %v4708_v56  ;;  %v4751_v55 = vld [vmem:[%s6213_s3 + $0x2a4] ss:$12 sps:$4 sm:$0xff]   ;;  %v4749_v56 = vld [vmem:[%s6213_s3 + $0x2a0] ss:$12 sps:$4 sm:$0xff]  }
 0x1b6   :  { %3042 = vmatprep.subr.bf16.mxu1 %v4711_v57  ;;  %4133 = vmatprep.subr.bf16.mxu0 %v4712_v58  ;;  %v4756_v57 = vld [vmem:[%s6213_s3 + $0x368] ss:$12 sps:$4 sm:$0xff]  }
 0x1b7   :  { %v4755_v58 = vld [vmem:[%s6213_s3 + $0x2bc] ss:$12 sps:$4 sm:$0xff]  }
 0x1b9   :  { %3043 = vmatpush1.bf16.msra.mxu1 %v4709_v59  ;;  %4134 = vmatpush3.bf16.msra.mxu0 %v4713_v60  ;;  %v4753_v59 = vld [vmem:[%s6213_s3 + $0x2b8] ss:$12 sps:$4 sm:$0xff]   ;;  %v4760_v60 = vld [vmem:[%s6213_s3 + $0x380] ss:$12 sps:$4 sm:$0xff]  }
 0x1ba   :  { %3044 = vmatprep.subr.bf16.mxu1 %v4716_v61  ;;  %4135 = vmatprep.subr.bf16.mxu0 %v4717_v62  ;;  %v4759_v61 = vld [vmem:[%s6213_s3 + $0x2d4] ss:$12 sps:$4 sm:$0xff]  }
 0x1bd   :  { %3045 = vmatpush1.bf16.msra.mxu1 %v4714_v63  ;;  %4136 = vmatpush3.bf16.msra.mxu0 %v4718_v0  ;;  %v4757_v63 = vld [vmem:[%s6213_s3 + $0x2d0] ss:$12 sps:$4 sm:$0xff]   ;;  %v4764_v0 = vld [vmem:[%s6213_s3 + $0x398] ss:$12 sps:$4 sm:$0xff]  }
 0x1be   :  { %3046 = vmatprep.subr.bf16.mxu1 %v4721_v1  ;;  %4137 = vmatprep.subr.bf16.mxu0 %v4722_v2  ;;  %v4763_v2 = vld [vmem:[%s6213_s3 + $0x2ec] ss:$12 sps:$4 sm:$0xff]  }
 0x1c1   :  { %3047 = vmatpush1.bf16.msra.mxu1 %v4719_v3  ;;  %4138 = vmatpush3.bf16.msra.mxu0 %v4723_v4  ;;  %v4053_v15 = vpop.f32.mrb[4].mxu0  ;;  %v4075_v18 = vpop.f32.mrb[4].mxu1 }
 0x1c2   :  { %3048 = vmatprep.subr.bf16.mxu1 %v4726_v11  ;;  %4139 = vmatprep.subr.bf16.mxu0 %v4727_v12  ;;  %v4054_v21 = vpop.f32.mrb[5].mxu0  ;;  %v4076_v22 = vpop.f32.mrb[5].mxu1 }
 0x1c3   :  { %v4055_v23 = vadd.f32 %v4054_v21, %v4053_v15  ;;  %v4056_v24 = vpop.f32.mrb[6].mxu0  ;;  %v4077_v27 = vadd.f32 %v4076_v22, %v4075_v18  ;;  %v4078_v28 = vpop.f32.mrb[6].mxu1  ;;  %v4767_v15 = vld [vmem:[%s6213_s3 + $0x304] ss:$12 sps:$4 sm:$0xff]   ;;  %v4765_v21 = vld [vmem:[%s6213_s3 + $0x300] ss:$12 sps:$4 sm:$0xff]  }
 0x1c4   :  { %v4057_v29 = vpop.f32.mrb[7].mxu0  ;;  %v4079_v30 = vpop.f32.mrb[7].mxu1  ;;  %v4771_v22 = vld [vmem:[%s6213_s3 + $0x31c] ss:$12 sps:$4 sm:$0xff]  }
 0x1c5   :  { %3049 = vmatpush1.bf16.msra.mxu1 %v4724_v13  ;;  %4140 = vmatpush3.bf16.msra.mxu0 %v4728_v14  ;;  %v2032_v33 = vadd.f32 %v4055_v23, %v369_v16  ;;  %v4058_v34 = vadd.f32 %v4057_v29, %v4056_v24  ;;  %v4080_v35 = vadd.f32 %v4079_v30, %v4078_v28  ;;  %v4761_v13 = vld [vmem:[%s6213_s3 + $0x2e8] ss:$12 sps:$4 sm:$0xff]   ;;  %v4768_v14 = vld [vmem:[%s6213_s3 + $0x3b0] ss:$12 sps:$4 sm:$0xff]  }
 0x1c6   :  { %3050 = vmatprep.subr.bf16.mxu1 %v4731_v19  ;;  %4141 = vmatprep.subr.bf16.mxu0 %v4732_v20  ;;  %v4774_v28 = vld [vmem:[%s6213_s3 + $0x334] ss:$12 sps:$4 sm:$0xff]   ;;  %v4772_v29 = vld [vmem:[%s6213_s3 + $0x330] ss:$12 sps:$4 sm:$0xff]  }
 0x1c7   :  { %v2035_v38 = vadd.f32 %v4058_v34, %v369_v16  ;;  %v5964_v39 = vadd.f32 %v4077_v27, %v2032_v33  ;;  %v4769_v27 = vld [vmem:[%s6213_s3 + $0x318] ss:$12 sps:$4 sm:$0xff]   ;;  %v4786_v34 = vld [vmem:[%s6213_s3 + $0x394] ss:$12 sps:$4 sm:$0xff]  }
 0x1c8   :  { %v4780_v30 = vld [vmem:[%s6213_s3 + $0x364] ss:$12 sps:$4 sm:$0xff]  }
 0x1c9   :  { %3051 = vmatpush1.bf16.msra.mxu1 %v4729_v17  ;;  %4142 = vmatpush3.bf16.msra.mxu0 %v4733_v32  ;;  %v5972_v42 = vadd.f32 %v4080_v35, %v2035_v38  ;;  %v5974_v26 = vpop.f32.mrb[8].mxu1  ;;  %v4778_v17 = vld [vmem:[%s6213_s3 + $0x360] ss:$12 sps:$4 sm:$0xff]   ;;  %v4783_v32 = vld [vmem:[%s6213_s3 + $0x37c] ss:$12 sps:$4 sm:$0xff]  }
 0x1ca   :  { %3052 = vmatprep.subr.bf16.mxu1 %v4736_v37  ;;  %4196 = vmatprep.subr.bf16.mxu0 %v4823_v6  ;;  %v4194_v44 = vpop.f32.mrb[9].mxu1  ;;  %v4781_v33 = vld [vmem:[%s6213_s3 + $0x378] ss:$12 sps:$4 sm:$0xff]   ;;  %v4784_v35 = vld [vmem:[%s6213_s3 + $0x390] ss:$12 sps:$4 sm:$0xff]  }
 0x1cb   :  { %v5980_v50 = vpop.f32.mrb[10].mxu1  ;;  %v4789_v37 = vld [vmem:[%s6213_s3 + $0x3ac] ss:$12 sps:$4 sm:$0xff]   ;;  %v4787_v38 = vld [vmem:[%s6213_s3 + $0x3a8] ss:$12 sps:$4 sm:$0xff]  }
 0x1cc   :  { %3196 = vmatmul.mubr.bf16.vlgmr.msra.gmra.mrb[16].mxu0 %v5867_v45  ;;  %v4195_v46 = vpop.f32.mrb[11].mxu1  ;;  %v4796_v44 = vld [vmem:[%s6215_s5 + $0x58] sm:$0xff]  }
 0x1cd   :  { %3053 = vmatpush1.bf16.msra.mxu1 %v4734_v40  ;;  %4197 = vmatpush3.bf16.msra.mxu0 %v4740_v41  ;;  %v4791_v40 = vld [vmem:[%s6215_s5] sm:$0xff]   ;;  %v4792_v41 = vld [vmem:[%s6215_s5 + $0x48] sm:$0xff]  }
 0x1ce   :  { %3054 = vmatprep.subr.bf16.mxu1 %v4739_v43  ;;  %4198 = vmatprep.subr.bf16.mxu0 %v4823_v6  ;;  %v4795_v43 = vld [vmem:[%s6215_s5 + $0x10] sm:$0xff]   ;;  %v4798_v46 = vld [vmem:[%s6215_s5 + $0x60] sm:$0xff]  }
 0x1cf   :  { %4212 = vmatprep.mubr.msk.bf16.mxu0 %vm4824_vm1, %v4823_v6 }
 0x1d1   :  { %3055 = vmatpush1.bf16.msra.mxu1 %v4737_v36  ;;  %4199 = vmatpush3.bf16.msra.mxu0 %v4744_v47  ;;  %v4799_v36 = vld [vmem:[%s6215_s5 + $0x20] sm:$0xff]   ;;  %v4800_v47 = vld [vmem:[%s6215_s5 + $0x68] sm:$0xff]  }
 0x1d2   :  { %3056 = vmatprep.subr.bf16.mxu1 %v4743_v48  ;;  %4200 = vmatprep.subr.bf16.mxu0 %v4823_v6  ;;  %v4801_v48 = vld [vmem:[%s6215_s5 + $0x28] sm:$0xff]  }
 0x1d5   :  { %3057 = vmatpush1.bf16.msra.mxu1 %v4741_v49  ;;  %4201 = vmatpush3.bf16.msra.mxu0 %v4748_v51  ;;  %v4802_v49 = vld [vmem:[%s6215_s5 + $0x70] sm:$0xff]  }
 0x1d6   :  { %3058 = vmatprep.subr.bf16.mxu1 %v4747_v52  ;;  %4202 = vmatprep.subr.bf16.mxu0 %v4823_v6  ;;  %v4803_v51 = vld [vmem:[%s6215_s5 + $0x30] sm:$0xff]   ;;  %v4804_v52 = vld [vmem:[%s6215_s5 + $0x78] sm:$0xff]  }
 0x1d9   :  { %3059 = vmatpush1.bf16.msra.mxu1 %v4745_v53  ;;  %4203 = vmatpush3.bf16.msra.mxu0 %v4752_v54  ;;  %v4805_v53 = vld [vmem:[%s6215_s5 + $0x38] sm:$0xff]  }
 0x1da   :  { %3060 = vmatprep.subr.bf16.mxu1 %v4751_v55  ;;  %4204 = vmatprep.subr.bf16.mxu0 %v4823_v6 }
 0x1dd   :  { %3061 = vmatpush1.bf16.msra.mxu1 %v4749_v56  ;;  %4205 = vmatpush3.bf16.msra.mxu0 %v4756_v57 }
 0x1de   :  { %3062 = vmatprep.subr.bf16.mxu1 %v4755_v58  ;;  %4206 = vmatprep.subr.bf16.mxu0 %v4823_v6 }
 0x1e1   :  { %v4097_v62 = vpop.f32.mrb[8].mxu0  ;;  %3063 = vmatpush1.bf16.msra.mxu1 %v4753_v59  ;;  %4207 = vmatpush3.bf16.msra.mxu0 %v4760_v60  ;;  %v2336_v60 = vld [vmem:[%s6216_s4] sm:$0x7] }
 0x1e2   :  { %v4098_v1 = vpop.f32.mrb[9].mxu0  ;;  %3064 = vmatprep.subr.bf16.mxu1 %v4759_v61  ;;  %4208 = vmatprep.subr.bf16.mxu0 %v4823_v6  ;;  %v2349_v61 = vrot.slane %v2336_v60, %v360_v9  ;;  %v2341_v9 = vrot.slane %v2336_v60, %v352_v10  ;;  %v4806_v10 = vld [vmem:[%s6215_s5 + $0x80] sm:$0xff]  }
 0x1e3   :  { %v4099_v3 = vadd.f32 %v4098_v1, %v4097_v62  ;;  %v4100_v4 = vpop.f32.mrb[10].mxu0 }
 0x1e4   :  { %v4101_v5 = vpop.f32.mrb[11].mxu0 }
 0x1e5   :  { %v4102_v11 = vadd.f32 %v4101_v5, %v4100_v4  ;;  %3065 = vmatpush1.bf16.msra.mxu1 %v4757_v63  ;;  %v2114_v12 = vadd.f32 %v4099_v3, %v5964_v39  ;;  %4209 = vmatpush3.bf16.msra.mxu0 %v4764_v0  ;;  %v4790_v39 = vld [vmem:[%s6215_s5 + $0x40] sm:$0xff]  }
 0x1e6   :  { %3066 = vmatprep.subr.bf16.mxu1 %v4763_v2  ;;  %4210 = vmatprep.subr.bf16.mxu0 %v4823_v6 }
 0x1e7   :  { %v2155_v16 = vadd.f32 %v5974_v26, %v2114_v12  ;;  %v2117_v18 = vadd.f32 %v4102_v11, %v5972_v42  ;;  %v4793_v42 = vld [vmem:[%s6215_s5 + $0x8] sm:$0xff]   ;;  %v4794_v26 = vld [vmem:[%s6215_s5 + $0x50] sm:$0xff]  }
 0x1e9   :  { %v2165_v19 = vmax.f32 %v2155_v16, 0.0  ;;  %v2158_v20 = vadd.f32 %v5980_v50, %v2117_v18  ;;  %3067 = vmatpush1.bf16.msra.mxu1 %v4761_v13  ;;  %4211 = vmatpush3.bf16.msra.mxu0 %v4768_v14  ;;  %v4797_v50 = vld [vmem:[%s6215_s5 + $0x18] sm:$0xff]  }
 0x1ea   :  { %3079 = vmatprep.subr.bf16.mxu1 %v4767_v15  ;;  %4158 = vmatprep.subr.bf16.mxu0 %v4790_v39  ;;  %v4809_v39 = vld [vmem:[%s6215_s5 + $0x98] sm:$0xff]  }
 0x1eb   :  { %v2170_v23 = vmax.f32 %v2158_v20, 0.0 }
 0x1ec   :  { %3069 = vmatmul.mubr.bf16.vlgmr.msra.gmra.mrb[12].mxu1 %v5867_v45  ;;  %v4777_v45 = vld [vmem:[%s6213_s3 + $0x34c] ss:$12 sps:$4 sm:$0xff]  }
 0x1ed   :  { %v2175_v24 = vpack.c.bf16 %v2170_v23, %v2165_v19  ;;  %3080 = vmatpush1.bf16.msra.mxu1 %v4765_v21  ;;  %3111 = vmatprep.mubr.bf16.mxu1 %v4822_v31  ;;  %v4775_v31 = vld [vmem:[%s6213_s3 + $0x348] ss:$12 sps:$4 sm:$0xff]   ;;  %v2345_v23 = vrot.slane %v2336_v60, %v356_v25  ;;  %v3594_v60 = vand.u32 127, %v350_v7 }
 0x1ee   :  { %3081 = vmatprep.subr.bf16.mxu1 %v4771_v22  ;;  %v4808_v25 = vld [vmem:[%s6215_s5 + $0x90] sm:$0xff]  }
 0x1ef   :  { %4213 = vmatmul.mubr.bf16.vlgmr.msra.gmra.mrb[20].mxu0 %v2175_v24  ;;  %vm3595_vm3 = vcmp.lt.s32.totalorder %v3594_v60, 10 }
 0x1f0   :  { %4159 = vmatpush3.bf16.msra.mxu0 %v4791_v40  ;;  %v4810_v40 = vld [vmem:[%s6217_s7] sm:$0xff]  }
 0x1f1   :  { %3082 = vmatpush1.bf16.msra.mxu1 %v4769_v27  ;;  %4160 = vmatprep.subr.bf16.mxu0 %v4792_v41  ;;  %v4811_v41 = vld [vmem:[%s6217_s7 + $0x8] sm:$0xff]  }
 0x1f2   :  { %3083 = vmatprep.subr.bf16.mxu1 %v4774_v28 }
 0x1f4   :  { %4161 = vmatpush3.bf16.msra.mxu0 %v4793_v42  ;;  %v4812_v42 = vld [vmem:[%s6217_s7 + $0x10] sm:$0xff]  }
 0x1f5   :  { %3084 = vmatpush1.bf16.msra.mxu1 %v4772_v29  ;;  %4162 = vmatprep.subr.bf16.mxu0 %v4794_v26  ;;  %v4813_v26 = vld [vmem:[%s6217_s7 + $0x18] sm:$0xff]  }
 0x1f6   :  { %3085 = vmatprep.subr.bf16.mxu1 %v4777_v45 }
 0x1f8   :  { %4163 = vmatpush3.bf16.msra.mxu0 %v4795_v43 }
 0x1f9   :  { %3086 = vmatpush1.bf16.msra.mxu1 %v4775_v31  ;;  %4164 = vmatprep.subr.bf16.mxu0 %v4796_v44 }
 0x1fa   :  { %3087 = vmatprep.subr.bf16.mxu1 %v4780_v30 }
 0x1fc   :  { %4165 = vmatpush3.bf16.msra.mxu0 %v4797_v50 }
 0x1fd   :  { %3088 = vmatpush1.bf16.msra.mxu1 %v4778_v17  ;;  %4166 = vmatprep.subr.bf16.mxu0 %v4798_v46 }
 0x1fe   :  { %3089 = vmatprep.subr.bf16.mxu1 %v4783_v32 }
 0x200   :  { %4167 = vmatpush3.bf16.msra.mxu0 %v4799_v36 }
 0x201   :  { %3090 = vmatpush1.bf16.msra.mxu1 %v4781_v33  ;;  %4168 = vmatprep.subr.bf16.mxu0 %v4800_v47 }
 0x202   :  { %3091 = vmatprep.subr.bf16.mxu1 %v4786_v34 }
 0x204   :  { %4169 = vmatpush3.bf16.msra.mxu0 %v4801_v48  ;;  %v4000_v48 = vld [vmem:[%s6218_s6] ss:$0 sm:$0xff] }
 0x205   :  { %3092 = vmatpush1.bf16.msra.mxu1 %v4784_v35  ;;  %4170 = vmatprep.subr.bf16.mxu0 %v4802_v49 }
 0x206   :  { %3093 = vmatprep.subr.bf16.mxu1 %v4789_v37 }
 0x208   :  { %4171 = vmatpush3.bf16.msra.mxu0 %v4803_v51 }
 0x209   :  { %3094 = vmatpush1.bf16.msra.mxu1 %v4787_v38  ;;  %4172 = vmatprep.subr.bf16.mxu0 %v4804_v52 }
 0x20a   :  { %4228 = vmatprep.subr.bf16.mxu1 %v4823_v6 }
 0x20c   :  { %3112 = vmatmul.mubr.bf16.vlgmr.msra.gmra.mrb[12].mxu1 %v2175_v24  ;;  %4173 = vmatpush3.bf16.msra.mxu0 %v4805_v53 }
 0x20d   :  { %4236 = vmatprep.mubr.msk.bf16.mxu1 %vm4824_vm1, %v4823_v6  ;;  %4216 = vmatprep.subr.bf16.mxu0 %v4823_v6 }
 0x20e   :  { %4229 = vmatpush3.bf16.msra.mxu1 %v4810_v40 }
 0x20f   :  { %4230 = vmatprep.subr.bf16.mxu1 %v4823_v6 }
 0x212   :  { %4231 = vmatpush3.bf16.msra.mxu1 %v4811_v41 }
 0x213   :  { %4232 = vmatprep.subr.bf16.mxu1 %v4823_v6 }
 0x216   :  { %4233 = vmatpush3.bf16.msra.mxu1 %v4812_v42 }
 0x217   :  { %4234 = vmatprep.subr.bf16.mxu1 %v4823_v6 }
 0x21a   :  { %4235 = vmatpush3.bf16.msra.mxu1 %v4813_v26 }
 0x27f   :  { %v4121_v54 = vpop.f32.mrb[12].mxu0 }
 0x280   :  { %v4122_v55 = vpop.f32.mrb[13].mxu0 }
 0x281   :  { %v4123_v56 = vadd.f32 %v4122_v55, %v4121_v54  ;;  %v4124_v57 = vpop.f32.mrb[14].mxu0 }
 0x282   :  { %v4125_v58 = vpop.f32.mrb[15].mxu0 }
 0x283   :  { %v4126_v59 = vadd.f32 %v4125_v58, %v4124_v57  ;;  %v3157_v0 = vadd.f32 %v4123_v56, %v2349_v61 }
 0x285   :  { %v3160_v4 = vadd.f32 %v4126_v59, %v2349_v61  ;;  %v4022_v61 = vld [vmem:[%s6219_s8] ss:$0 sm:$0xff] }
 0x29f   :  { %v4143_v62 = vpop.f32.mrb[16].mxu0 }
 0x2a0   :  { %v4144_v63 = vpop.f32.mrb[17].mxu0 }
 0x2a1   :  { %v4145_v1 = vadd.f32 %v4144_v63, %v4143_v62  ;;  %v4146_v2 = vpop.f32.mrb[18].mxu0 }
 0x2a2   :  { %v4147_v3 = vpop.f32.mrb[19].mxu0 }
 0x2a3   :  { %v4148_v5 = vadd.f32 %v4147_v3, %v4146_v2  ;;  %v3198_v11 = vadd.f32 %v4145_v1, %v3157_v0 }
 0x2a5   :  { %v3201_v12 = vadd.f32 %v4148_v5, %v3160_v4 }
 0x2c2   :  { %v3238_v13 = vpop.f32.mrb[20].mxu0 }
 0x2c3   :  { %v3239_v14 = vadd.f32 %v3238_v13, %v3198_v11  ;;  %v4214_v15 = vpop.f32.mrb[21].mxu0 }
 0x2c4   :  { %v3241_v16 = vpop.f32.mrb[22].mxu0 }
 0x2c5   :  { %v3242_v18 = vadd.f32 %v3241_v16, %v3201_v12  ;;  %v4215_v19 = vpop.f32.mrb[23].mxu0  ;;  %v3247_v20 = vmax.f32 %v3239_v14, 0.0 }
 0x2c7   :  { %v3250_v21 = vmax.f32 %v3242_v18, 0.0 }
 0x2c9   :  { %v3253_v22 = vpack.c.bf16 %v3250_v21, %v3247_v20 }
 0x2df   :  { %v3113_v24 = vpop.f32.mrb[12].mxu1 }
 0x2e0   :  { %v4248_v27 = vadd.f32 %v3113_v24, %v2341_v9  ;;  %v3115_v28 = vpop.f32.mrb[13].mxu1 }
 0x2e1   :  { %v4249_v29 = vadd.f32 %v3115_v28, %v2345_v23  ;;  %v3117_v45 = vpop.f32.mrb[14].mxu1 }
 0x2e2   :  { %v4250_v31 = vadd.f32 %v3117_v45, %v2341_v9  ;;  %v3119_v30 = vpop.f32.mrb[15].mxu1  ;;  %v3245_v32 = vmax.f32 %v4248_v27, 0.0 }
 0x2e3   :  { %v4251_v17 = vadd.f32 %v3119_v30, %v2345_v23  ;;  %v3246_v34 = vmax.f32 %v4249_v29, 0.0 }
 0x2e4   :  { %v3248_v33 = vmax.f32 %v4250_v31, 0.0 }
 0x2e5   :  { %v3249_v35 = vmax.f32 %v4251_v17, 0.0 }
 0x2e6   :  { %v3251_v37 = vpack.c.bf16 %v3248_v33, %v3245_v32 }
 0x2e7   :  { %v3252_v38 = vpack.c.bf16 %v3249_v35, %v3246_v34 }
 0x2e9   :  { %3457 = vmatprep.mubr.bf16.mxu0 %v3252_v38 }
 0x2ea   :  { %3458 = vmatmul.mubr.bf16.vlgmr.msra.gmra.mrb[24].mxu0 %v3251_v37 }
 0x2eb   :  { %4217 = vmatpush3.bf16.msra.mxu0 %v4806_v10  ;;  %4224 = vmatprep.mubr.msk.bf16.mxu0 %vm4824_vm1, %v4823_v6 }
 0x2ec   :  { %4218 = vmatprep.subr.bf16.mxu0 %v4823_v6 }
 0x2ef   :  { %4219 = vmatpush3.bf16.msra.mxu0 %v4807_v8 }
 0x2f0   :  { %4220 = vmatprep.subr.bf16.mxu0 %v4823_v6 }
 0x2f3   :  { %4221 = vmatpush3.bf16.msra.mxu0 %v4808_v25 }
 0x2f4   :  { %4222 = vmatprep.subr.bf16.mxu0 %v4823_v6 }
 0x2f7   :  { %4223 = vmatpush3.bf16.msra.mxu0 %v4809_v39 }
 0x2fa   :  { %4225 = vmatmul.mubr.msk.bf16.vlgmr.msra.gmra.mrb[28].mxu0 %vm3421_vm2, %v3253_v22 }
 0x3bd   :  { %v4174_v43 = vpop.f32.mrb[24].mxu0 }
 0x3be   :  { %v4175_v44 = vpop.f32.mrb[25].mxu0 }
 0x3bf   :  { %v4176_v50 = vadd.f32 %v4175_v44, %v4174_v43  ;;  %v4177_v46 = vpop.f32.mrb[26].mxu0 }
 0x3c0   :  { %v4178_v36 = vpop.f32.mrb[27].mxu0 }
 0x3c1   :  { %v4179_v47 = vadd.f32 %v4178_v36, %v4177_v46  ;;  %v3460_v49 = vadd.f32 %v4176_v50, %v4000_v48 }
 0x3c3   :  { %v3463_v6 = vadd.f32 %v4179_v47, %v4000_v48 }
 0x3cd   :  { %v3500_v51 = vpop.f32.mrb[28].mxu0 }
 0x3ce   :  { %v3501_v52 = vadd.f32 %v3500_v51, %v3460_v49  ;;  %v4226_v53 = vpop.f32.mrb[29].mxu0 }
 0x3cf   :  { %v3503_v54 = vpop.f32.mrb[30].mxu0 }
 0x3d0   :  { %v3504_v55 = vadd.f32 %v3503_v54, %v3463_v6  ;;  %v4227_v56 = vpop.f32.mrb[31].mxu0  ;;  %v3507_v57 = vmax.f32 %v3501_v52, 0.0 }
 0x3d2   :  { %v3508_v58 = vmax.f32 %v3504_v55, 0.0 }
 0x3d4   :  { %v3509_v59 = vpack.c.bf16 %v3508_v58, %v3507_v57 }
 0x3d6   :  { %4237 = vmatmul.mubr.msk.bf16.vlgmr.msra.gmra.mrb[16].mxu1 %vm3421_vm2, %v3509_v59 }
 0x4a9   :  { %v3586_v62 = vpop.f32.mrb[16].mxu1 }
 0x4aa   :  { %v3587_v63 = vadd.f32 %v4022_v61, %v3586_v62  ;;  %v4238_v0 = vpop.f32.mrb[17].mxu1 }
 0x4ab   :  { %v3589_v1 = vpop.f32.mrb[18].mxu1 }
 0x4ac   :  { %v3590_v2 = vadd.f32 %v4022_v61, %v3589_v1  ;;  %v4239_v3 = vpop.f32.mrb[19].mxu1  ;;  %v3596_v4 = vsel %vm3595_vm3, %v3587_v63, -1e+30 }
 0x4ad   :  { %3598 = vmax.xlane.f32.xlu0 %v3596_v4 }
 0x4ae   :  { %v3597_v5 = vsel %vm3595_vm3, %v3590_v2, -1e+30 }
 0x4b1   :  { %3600 = vmax.xlane.f32.xlu0 %v3597_v5 }
 0x53a   :  { %v3599_v11 = vpop.xlane.xlu0 %3598 }
 0x53b   :  { %v3602_v12 = vsub.f32 %v3596_v4, %v3599_v11 }
 0x53d   :  { %v3604_v13 = vmul.f32 1.442695, %v3602_v12 }
 0x53e   :  { %v3601_v14 = vpop.xlane.xlu0 %3600 }
 0x53f   :  { %v3603_v7 = vsub.f32 %v3597_v5, %v3601_v14  ;;  %4814 = vpow2.f32 %v3604_v13 }
 0x541   :  { %v3606_v15 = vmul.f32 1.442695, %v3603_v7 }
 0x543   :  { %4816 = vpow2.f32 %v3606_v15 }
 0x549   :  { %v4815_v16 = vpop.eup %4814 }
 0x54a   :  { %3608 = vadd.xlane.f32.xlu1 %v4815_v16 }
 0x54d   :  { %v4817_v18 = vpop.eup %4816 }
 0x54e   :  { %3610 = vadd.xlane.f32.xlu1 %v4817_v18 }
 0x5d7   :  { %v3609_v19 = vpop.xlane.xlu1 %3608 }
 0x5d8   :  { %4818 = vlog2.f32 %v3609_v19 }
 0x5db   :  { %v3611_v20 = vpop.xlane.xlu1 %3610 }
 0x5dc   :  { %4820 = vlog2.f32 %v3611_v20 }
 0x5e2   :  { %v4819_v21 = vpop.eup %4818 }
 0x5e3   :  { %v3613_v22 = vmul.f32 0.6931472, %v4819_v21 }
 0x5e5   :  { %v3616_v24 = vsub.f32 %v3602_v12, %v3613_v22 }
 0x5e6   :  { %v4821_v9 = vpop.eup %4820 }
 0x5e7   :  { %v3615_v23 = vmul.f32 0.6931472, %v4821_v9 }
 0x5e9   :  { %v3617_v27 = vsub.f32 %v3603_v7, %v3615_v23 }
 0x5eb   :  { %v4035_v28 = vpack.c.bf16 %v3617_v27, %v3616_v24 }
 0x5ed   :  { %4036 = vst [vmem:[%s6220_s9] sm:$0xff] %v4035_v28  }

</bundles_post_ra>
